<compile_context>
chip_gen: v7x
topology: tpu7x:2x2x1
jax: 0.10.0
libtpu: 0.0.40
codegen_flags: <defaults>
</compile_context>

<pallas_src>
import math
from functools import partial

import numpy as np
import jax
import jax.numpy as jnp
from jax.experimental import pallas as pl
from jax.experimental.pallas import tpu as pltpu


# ----------------------------- kernel ---------------------------------------


def perceiver_block_kernel(lat_ref, txt_ref, *refs,
                           cross_heads, self_heads, compute_dtype,
                           approx_recip):
    (cwq_r, cbq_r, cwk_r, cbk_r, cwv_r, cbv_r, cwo_r, cbo_r,
     w1a_r, b1a_r, w1b_r, b1b_r,
     swq_r, sbq_r, swk_r, sbk_r, swv_r, sbv_r, swo_r, sbo_r,
     w2a_r, b2a_r, w2b_r, b2b_r, out_ref) = refs

    cd = compute_dtype

    lat = lat_ref[0]                       # [N, D] f32 — this grid step's example
    txt = txt_ref[0]                       # [S, E] f32

    def mm(a, w_ref):
        # a @ W on the MXU, operands in compute_dtype, f32 accumulation.
        return jnp.dot(a.astype(cd), w_ref[...].astype(cd),
                       preferred_element_type=jnp.float32)

    def mm_nt(a, b):
        # a @ b.T without materializing the transpose: contract dim 1 of both,
        # letting Mosaic feed the MXU with the transposed operand directly.
        return jax.lax.dot_general(
            a.astype(cd), b.astype(cd),
            dimension_numbers=(((1,), (1,)), ((), ())),
            preferred_element_type=jnp.float32)

    def linear(x, w_ref, b_ref):
        return mm(x, w_ref) + b_ref[...]   # bias add stays f32

    def mish(x):
        # x * tanh(softplus(x)); single stable softplus, all in f32.
        sp = jnp.maximum(x, 0.0) + jnp.log1p(jnp.exp(-jnp.abs(x)))
        return x * jnp.tanh(sp)

    def attention(q, k, v, wo_ref, bo_ref, heads):
        # q: [N, D]; k, v: [L, D].  Per-head softmax(q k^T / sqrt(dh)) v,
        # then ONE deep-K [N, D] @ [D, D] output projection (no per-head
        # shallow-K folds).  Softmax math stays f32.
        D_ = q.shape[-1]
        dh = D_ // heads
        scale = 1.0 / math.sqrt(dh)
        outs = []
        for h in range(heads):             # heads is tiny -> static unroll
            lo, hi = h * dh, (h + 1) * dh
            s = mm_nt(q[:, lo:hi], k[:, lo:hi]) * scale          # [N, L] f32
            m_ = jnp.max(s, axis=-1, keepdims=True)
            e = jnp.exp(s - m_)
            p = e * pl.reciprocal(jnp.sum(e, axis=-1, keepdims=True),
                                  approx=approx_recip)
            outs.append(jnp.dot(p.astype(cd), v[:, lo:hi].astype(cd),
                                preferred_element_type=jnp.float32))
        head_out = jnp.concatenate(outs, axis=-1)                # [N, D]
        return mm(head_out, wo_ref) + bo_ref[...]

    # ---- cross attention: Q from latent, K/V from text ----------------------
    q = linear(lat, cwq_r, cbq_r)
    k = linear(txt, cwk_r, cbk_r)
    v = linear(txt, cwv_r, cbv_r)
    x = attention(q, k, v, cwo_r, cbo_r, cross_heads)

    # ---- dense block 1 -------------------------------------------------------
    x = mish(linear(x, w1a_r, b1a_r))
    x = mish(linear(x, w1b_r, b1b_r))

    # ---- self attention on the latent features ------------------------------
    q = linear(x, swq_r, sbq_r)
    k = linear(x, swk_r, sbk_r)
    v = linear(x, swv_r, sbv_r)
    x = attention(q, k, v, swo_r, sbo_r, self_heads)

    # ---- dense block 2 -------------------------------------------------------
    x = mish(linear(x, w2a_r, b2a_r))
    x = mish(linear(x, w2b_r, b2b_r))

    out_ref[0] = x.astype(out_ref.dtype)


# ----------------------------- wrapper ---------------------------------------


def perceiver_block_forward(latent, text, params, *, cross_heads, self_heads,
                            compute_dtype=jnp.float32):
    B, N, D = latent.shape
    _, S, E = text.shape
    assert D % cross_heads == 0 and D % self_heads == 0, \
        "latent_space_size must be divisible by the head counts"

    use_bf16 = np.dtype(compute_dtype) == np.dtype(jnp.bfloat16)

    # Weights (even indices) are stored in compute_dtype (halves weight HBM/VMEM
    # bytes and feeds the MXU bf16-natively in bf16 mode); biases stay f32.
    cast_params = [
        p.astype(compute_dtype) if i % 2 == 0 else p.astype(jnp.float32)
        for i, p in enumerate(params)
    ]

    kernel = partial(perceiver_block_kernel,
                     cross_heads=cross_heads, self_heads=self_heads,
                     compute_dtype=compute_dtype,
                     approx_recip=use_bf16)

    in_specs = [
        # Activations: one example per grid step (double-buffered by Pallas).
        pl.BlockSpec((1, N, D), lambda b: (b, 0, 0)),
        pl.BlockSpec((1, S, E), lambda b: (b, 0, 0)),
    ] + [
        # Parameters: constant block index -> VMEM-resident across the batch grid.
        pl.BlockSpec(p.shape, lambda b: (0, 0)) for p in cast_params
    ]

    out = pl.pallas_call(
        kernel,
        out_shape=jax.ShapeDtypeStruct((B, N, D), jnp.float32),
        grid=(B,),
        in_specs=in_specs,
        out_specs=pl.BlockSpec((1, N, D), lambda b: (b, 0, 0)),
        compiler_params=pltpu.CompilerParams(
            dimension_semantics=("parallel",),      # megacore: split batch
            vmem_limit_bytes=32 * 1024 * 1024),
    )(latent.astype(jnp.float32), text.astype(jnp.float32), *cast_params)

    return out


# ----------------------------- params & reference ----------------------------


def init_params(key, D, E):
    """12 Linear layers, stored as (W[in, out], b[1, out])."""
    dims = [
        (D, D), (E, D), (E, D), (D, D),   # cross attn q, k, v, o
        (D, D), (D, D),                   # dense block 1
        (D, D), (D, D), (D, D), (D, D),   # self attn q, k, v, o
        (D, D), (D, D),                   # dense block 2
    ]
    keys = jax.random.split(key, 2 * len(dims))
    params = []
    for i, (din, dout) in enumerate(dims):
        w = jax.random.normal(keys[2 * i], (din, dout), jnp.float32) / math.sqrt(din)
        b = jax.random.normal(keys[2 * i + 1], (1, dout), jnp.float32) * 0.05
        params += [w, b]
    return params


def reference_forward(latent, text, params, *, cross_heads, self_heads):
    (cwq, cbq, cwk, cbk, cwv, cbv, cwo, cbo,
     w1a, b1a, w1b, b1b,
     swq, sbq, swk, sbk, swv, sbv, swo, sbo,
     w2a, b2a, w2b, b2b) = params

    def mish(x):
        return x * jnp.tanh(jax.nn.softplus(x))

    def mha(q_in, kv_in, wq, bq, wk, bk, wv, bv, wo, bo, heads):
        q = q_in @ wq + bq
        k = kv_in @ wk + bk
        v = kv_in @ wv + bv
        D = q.shape[-1]
        dh = D // heads
        outs = []
        for h in range(heads):
            qh, kh, vh = (a[:, h * dh:(h + 1) * dh] for a in (q, k, v))
            p = jax.nn.softmax((qh @ kh.T) / math.sqrt(dh), axis=-1)
            outs.append(p @ vh)
        return jnp.concatenate(outs, axis=-1) @ wo + bo

    def dense(x, wa, ba, wb, bb):
        return mish(mish(x @ wa + ba) @ wb + bb)

    def one(lat, txt):
        x = mha(lat, txt, cwq, cbq, cwk, cbk, cwv, cbv, cwo, cbo, cross_heads)
        x = dense(x, w1a, b1a, w1b, b1b)
        x = mha(x, x, swq, sbq, swk, sbk, swv, sbv, swo, sbo, self_heads)
        x = dense(x, w2a, b2a, w2b, b2b)
        return x

    return jnp.stack([one(latent[b], text[b]) for b in range(latent.shape[0])])


# ----------------------------- demo -------------------------------------------


if __name__ == "__main__":
    key = jax.random.PRNGKey(0)
    B, N, S = 2, 8, 16
    D = 32                   # latent_space_size
    E = 32                   # embedding_dim (== D, see note above)
    cross_heads, self_heads = 2, 2

    k_lat, k_txt, k_par = jax.random.split(key, 3)
    latent_vectors = jax.random.normal(k_lat, (B, N, D), jnp.float32)
    input_sequence = jax.random.normal(k_txt, (B, S, E), jnp.float32)
    params = init_params(k_par, D, E)

    ref = reference_forward(latent_vectors, input_sequence, params,
                            cross_heads=cross_heads, self_heads=self_heads)

    # f32 path: tight correctness check against the PyTorch-equivalent reference.
    out = perceiver_block_forward(latent_vectors, input_sequence, params,
                                  cross_heads=cross_heads, self_heads=self_heads)
    out = jax.block_until_ready(out)
    assert out.shape == (B, N, D), out.shape
    err = float(jnp.max(jnp.abs(out - ref)))
    assert err < 5e-4, f"f32 max abs error {err}"

    # bf16-MXU path (the v6e/v7x performance configuration): same kernel with
    # bf16 matmul operands + f32 accumulation; loose sanity bound only.
    out_bf16 = perceiver_block_forward(latent_vectors, input_sequence, params,
                                       cross_heads=cross_heads,
                                       self_heads=self_heads,
                                       compute_dtype=jnp.bfloat16)
    out_bf16 = jax.block_until_ready(out_bf16)
    rel = float(jnp.max(jnp.abs(out_bf16 - ref)) /
                (jnp.max(jnp.abs(ref)) + 1e-6))
    assert rel < 0.25, f"bf16 relative error {rel}"

    print("KERNEL_OK")
</pallas_src>

<mosaic_0001>
module attributes {stable_mosaic.version = 11 : i64} {
  func.func @perceiver_block_kernel(%arg0: i32, %arg1: memref<1x8x32xf32, #tpu.memory_space<vmem>>, %arg2: memref<1x16x32xf32, #tpu.memory_space<vmem>>, %arg3: memref<32x32xf32, #tpu.memory_space<vmem>>, %arg4: memref<1x32xf32, #tpu.memory_space<vmem>>, %arg5: memref<32x32xf32, #tpu.memory_space<vmem>>, %arg6: memref<1x32xf32, #tpu.memory_space<vmem>>, %arg7: memref<32x32xf32, #tpu.memory_space<vmem>>, %arg8: memref<1x32xf32, #tpu.memory_space<vmem>>, %arg9: memref<32x32xf32, #tpu.memory_space<vmem>>, %arg10: memref<1x32xf32, #tpu.memory_space<vmem>>, %arg11: memref<32x32xf32, #tpu.memory_space<vmem>>, %arg12: memref<1x32xf32, #tpu.memory_space<vmem>>, %arg13: memref<32x32xf32, #tpu.memory_space<vmem>>, %arg14: memref<1x32xf32, #tpu.memory_space<vmem>>, %arg15: memref<32x32xf32, #tpu.memory_space<vmem>>, %arg16: memref<1x32xf32, #tpu.memory_space<vmem>>, %arg17: memref<32x32xf32, #tpu.memory_space<vmem>>, %arg18: memref<1x32xf32, #tpu.memory_space<vmem>>, %arg19: memref<32x32xf32, #tpu.memory_space<vmem>>, %arg20: memref<1x32xf32, #tpu.memory_space<vmem>>, %arg21: memref<32x32xf32, #tpu.memory_space<vmem>>, %arg22: memref<1x32xf32, #tpu.memory_space<vmem>>, %arg23: memref<32x32xf32, #tpu.memory_space<vmem>>, %arg24: memref<1x32xf32, #tpu.memory_space<vmem>>, %arg25: memref<32x32xf32, #tpu.memory_space<vmem>>, %arg26: memref<1x32xf32, #tpu.memory_space<vmem>>, %arg27: memref<1x8x32xf32, #tpu.memory_space<vmem>>) attributes {dimension_semantics = [#tpu.dimension_semantics<parallel>], iteration_bounds = array<i64: 2>, scalar_prefetch = 0 : i64, scratch_operands = 0 : i64, tpu.core_type = #tpu.core_type<tc>, window_params = [{transform_indices = @transform_0, window_bounds = array<i64: 1, 8, 32>}, {transform_indices = @transform_1, window_bounds = array<i64: 1, 16, 32>}, {pipeline_mode = #tpu.pipeline_mode<synchronous>, transform_indices = @transform_2, window_bounds = array<i64: 32, 32>}, {pipeline_mode = #tpu.pipeline_mode<synchronous>, transform_indices = @transform_3, window_bounds = array<i64: 1, 32>}, {pipeline_mode = #tpu.pipeline_mode<synchronous>, transform_indices = @transform_4, window_bounds = array<i64: 32, 32>}, {pipeline_mode = #tpu.pipeline_mode<synchronous>, transform_indices = @transform_5, window_bounds = array<i64: 1, 32>}, {pipeline_mode = #tpu.pipeline_mode<synchronous>, transform_indices = @transform_6, window_bounds = array<i64: 32, 32>}, {pipeline_mode = #tpu.pipeline_mode<synchronous>, transform_indices = @transform_7, window_bounds = array<i64: 1, 32>}, {pipeline_mode = #tpu.pipeline_mode<synchronous>, transform_indices = @transform_8, window_bounds = array<i64: 32, 32>}, {pipeline_mode = #tpu.pipeline_mode<synchronous>, transform_indices = @transform_9, window_bounds = array<i64: 1, 32>}, {pipeline_mode = #tpu.pipeline_mode<synchronous>, transform_indices = @transform_10, window_bounds = array<i64: 32, 32>}, {pipeline_mode = #tpu.pipeline_mode<synchronous>, transform_indices = @transform_11, window_bounds = array<i64: 1, 32>}, {pipeline_mode = #tpu.pipeline_mode<synchronous>, transform_indices = @transform_12, window_bounds = array<i64: 32, 32>}, {pipeline_mode = #tpu.pipeline_mode<synchronous>, transform_indices = @transform_13, window_bounds = array<i64: 1, 32>}, {pipeline_mode = #tpu.pipeline_mode<synchronous>, transform_indices = @transform_14, window_bounds = array<i64: 32, 32>}, {pipeline_mode = #tpu.pipeline_mode<synchronous>, transform_indices = @transform_15, window_bounds = array<i64: 1, 32>}, {pipeline_mode = #tpu.pipeline_mode<synchronous>, transform_indices = @transform_16, window_bounds = array<i64: 32, 32>}, {pipeline_mode = #tpu.pipeline_mode<synchronous>, transform_indices = @transform_17, window_bounds = array<i64: 1, 32>}, {pipeline_mode = #tpu.pipeline_mode<synchronous>, transform_indices = @transform_18, window_bounds = array<i64: 32, 32>}, {pipeline_mode = #tpu.pipeline_mode<synchronous>, transform_indices = @transform_19, window_bounds = array<i64: 1, 32>}, {pipeline_mode = #tpu.pipeline_mode<synchronous>, transform_indices = @transform_20, window_bounds = array<i64: 32, 32>}, {pipeline_mode = #tpu.pipeline_mode<synchronous>, transform_indices = @transform_21, window_bounds = array<i64: 1, 32>}, {pipeline_mode = #tpu.pipeline_mode<synchronous>, transform_indices = @transform_22, window_bounds = array<i64: 32, 32>}, {pipeline_mode = #tpu.pipeline_mode<synchronous>, transform_indices = @transform_23, window_bounds = array<i64: 1, 32>}, {pipeline_mode = #tpu.pipeline_mode<synchronous>, transform_indices = @transform_24, window_bounds = array<i64: 32, 32>}, {pipeline_mode = #tpu.pipeline_mode<synchronous>, transform_indices = @transform_25, window_bounds = array<i64: 1, 32>}, {transform_indices = @transform_26, window_bounds = array<i64: 1, 8, 32>}]} {
    %c0 = arith.constant 0 : index
    %c0_0 = arith.constant 0 : index
    %c0_1 = arith.constant 0 : index
    %0 = vector.load %arg1[%c0, %c0_0, %c0_1] : memref<1x8x32xf32, #tpu.memory_space<vmem>>, vector<1x8x32xf32>
    %1 = vector.shape_cast %0 : vector<1x8x32xf32> to vector<8x32xf32>
    %c0_2 = arith.constant 0 : index
    %c0_3 = arith.constant 0 : index
    %c0_4 = arith.constant 0 : index
    %2 = vector.load %arg2[%c0_2, %c0_3, %c0_4] : memref<1x16x32xf32, #tpu.memory_space<vmem>>, vector<1x16x32xf32>
    %3 = vector.shape_cast %2 : vector<1x16x32xf32> to vector<16x32xf32>
    %c0_5 = arith.constant 0 : index
    %c0_6 = arith.constant 0 : index
    %4 = vector.load %arg3[%c0_5, %c0_6] : memref<32x32xf32, #tpu.memory_space<vmem>>, vector<32x32xf32>
    %cst = arith.constant dense<0.000000e+00> : vector<8x32xf32>
    %5 = tpu.matmul %1, %4, %cst {dimension_numbers = #tpu.dot_dimension_numbers<[1], [0], [0], [1], [0, 0, 1, 1], [], []>} : vector<8x32xf32>, vector<32x32xf32>, vector<8x32xf32> -> vector<8x32xf32>
    %c0_7 = arith.constant 0 : index
    %c0_8 = arith.constant 0 : index
    %6 = vector.load %arg4[%c0_7, %c0_8] : memref<1x32xf32, #tpu.memory_space<vmem>>, vector<1x32xf32>
    %7 = vector.broadcast %6 : vector<1x32xf32> to vector<8x32xf32>
    %8 = arith.addf %5, %7 : vector<8x32xf32>
    %c0_9 = arith.constant 0 : index
    %c0_10 = arith.constant 0 : index
    %9 = vector.load %arg5[%c0_9, %c0_10] : memref<32x32xf32, #tpu.memory_space<vmem>>, vector<32x32xf32>
    %cst_11 = arith.constant dense<0.000000e+00> : vector<16x32xf32>
    %10 = tpu.matmul %3, %9, %cst_11 {dimension_numbers = #tpu.dot_dimension_numbers<[1], [0], [0], [1], [0, 0, 1, 1], [], []>} : vector<16x32xf32>, vector<32x32xf32>, vector<16x32xf32> -> vector<16x32xf32>
    %c0_12 = arith.constant 0 : index
    %c0_13 = arith.constant 0 : index
    %11 = vector.load %arg6[%c0_12, %c0_13] : memref<1x32xf32, #tpu.memory_space<vmem>>, vector<1x32xf32>
    %12 = vector.broadcast %11 : vector<1x32xf32> to vector<16x32xf32>
    %13 = arith.addf %10, %12 : vector<16x32xf32>
    %c0_14 = arith.constant 0 : index
    %c0_15 = arith.constant 0 : index
    %14 = vector.load %arg7[%c0_14, %c0_15] : memref<32x32xf32, #tpu.memory_space<vmem>>, vector<32x32xf32>
    %cst_16 = arith.constant dense<0.000000e+00> : vector<16x32xf32>
    %15 = tpu.matmul %3, %14, %cst_16 {dimension_numbers = #tpu.dot_dimension_numbers<[1], [0], [0], [1], [0, 0, 1, 1], [], []>} : vector<16x32xf32>, vector<32x32xf32>, vector<16x32xf32> -> vector<16x32xf32>
    %c0_17 = arith.constant 0 : index
    %c0_18 = arith.constant 0 : index
    %16 = vector.load %arg8[%c0_17, %c0_18] : memref<1x32xf32, #tpu.memory_space<vmem>>, vector<1x32xf32>
    %17 = vector.broadcast %16 : vector<1x32xf32> to vector<16x32xf32>
    %18 = arith.addf %15, %17 : vector<16x32xf32>
    %19 = vector.extract_strided_slice %8 {offsets = [0, 0], sizes = [8, 16], strides = [1, 1]} : vector<8x32xf32> to vector<8x16xf32>
    %20 = vector.extract_strided_slice %13 {offsets = [0, 0], sizes = [16, 16], strides = [1, 1]} : vector<16x32xf32> to vector<16x16xf32>
    %cst_19 = arith.constant dense<0.000000e+00> : vector<8x16xf32>
    %21 = tpu.matmul %19, %20, %cst_19 {dimension_numbers = #tpu.dot_dimension_numbers<[1], [1], [0], [0], [0, 0, 1, 0], [], []>} : vector<8x16xf32>, vector<16x16xf32>, vector<8x16xf32> -> vector<8x16xf32>
    %cst_20 = arith.constant 2.500000e-01 : f32
    %22 = vector.broadcast %cst_20 : f32 to vector<8x16xf32>
    %23 = arith.mulf %21, %22 : vector<8x16xf32>
    %cst_21 = arith.constant dense<0xFF800000> : vector<8xf32>
    %24 = vector.multi_reduction <maximumf>, %23, %cst_21 [1] : vector<8x16xf32> to vector<8xf32>
    %25 = vector.shape_cast %24 : vector<8xf32> to vector<8x1xf32>
    %26 = vector.broadcast %25 : vector<8x1xf32> to vector<8x16xf32>
    %27 = arith.subf %23, %26 : vector<8x16xf32>
    %28 = math.exp %27 : vector<8x16xf32>
    %cst_22 = arith.constant dense<0.000000e+00> : vector<8xf32>
    %29 = vector.multi_reduction <add>, %28, %cst_22 [1] : vector<8x16xf32> to vector<8xf32>
    %30 = vector.shape_cast %29 : vector<8xf32> to vector<8x1xf32>
    %31 = tpu.reciprocal %30 : vector<8x1xf32> -> vector<8x1xf32>
    %32 = vector.broadcast %31 : vector<8x1xf32> to vector<8x16xf32>
    %33 = arith.mulf %28, %32 : vector<8x16xf32>
    %34 = vector.extract_strided_slice %18 {offsets = [0, 0], sizes = [16, 16], strides = [1, 1]} : vector<16x32xf32> to vector<16x16xf32>
    %cst_23 = arith.constant dense<0.000000e+00> : vector<8x16xf32>
    %35 = tpu.matmul %33, %34, %cst_23 {dimension_numbers = #tpu.dot_dimension_numbers<[1], [0], [0], [1], [0, 0, 1, 1], [], []>} : vector<8x16xf32>, vector<16x16xf32>, vector<8x16xf32> -> vector<8x16xf32>
    %36 = vector.extract_strided_slice %8 {offsets = [0, 16], sizes = [8, 16], strides = [1, 1]} : vector<8x32xf32> to vector<8x16xf32>
    %37 = vector.extract_strided_slice %13 {offsets = [0, 16], sizes = [16, 16], strides = [1, 1]} : vector<16x32xf32> to vector<16x16xf32>
    %cst_24 = arith.constant dense<0.000000e+00> : vector<8x16xf32>
    %38 = tpu.matmul %36, %37, %cst_24 {dimension_numbers = #tpu.dot_dimension_numbers<[1], [1], [0], [0], [0, 0, 1, 0], [], []>} : vector<8x16xf32>, vector<16x16xf32>, vector<8x16xf32> -> vector<8x16xf32>
    %cst_25 = arith.constant 2.500000e-01 : f32
    %39 = vector.broadcast %cst_25 : f32 to vector<8x16xf32>
    %40 = arith.mulf %38, %39 : vector<8x16xf32>
    %cst_26 = arith.constant dense<0xFF800000> : vector<8xf32>
    %41 = vector.multi_reduction <maximumf>, %40, %cst_26 [1] : vector<8x16xf32> to vector<8xf32>
    %42 = vector.shape_cast %41 : vector<8xf32> to vector<8x1xf32>
    %43 = vector.broadcast %42 : vector<8x1xf32> to vector<8x16xf32>
    %44 = arith.subf %40, %43 : vector<8x16xf32>
    %45 = math.exp %44 : vector<8x16xf32>
    %cst_27 = arith.constant dense<0.000000e+00> : vector<8xf32>
    %46 = vector.multi_reduction <add>, %45, %cst_27 [1] : vector<8x16xf32> to vector<8xf32>
    %47 = vector.shape_cast %46 : vector<8xf32> to vector<8x1xf32>
    %48 = tpu.reciprocal %47 : vector<8x1xf32> -> vector<8x1xf32>
    %49 = vector.broadcast %48 : vector<8x1xf32> to vector<8x16xf32>
    %50 = arith.mulf %45, %49 : vector<8x16xf32>
    %51 = vector.extract_strided_slice %18 {offsets = [0, 16], sizes = [16, 16], strides = [1, 1]} : vector<16x32xf32> to vector<16x16xf32>
    %cst_28 = arith.constant dense<0.000000e+00> : vector<8x16xf32>
    %52 = tpu.matmul %50, %51, %cst_28 {dimension_numbers = #tpu.dot_dimension_numbers<[1], [0], [0], [1], [0, 0, 1, 1], [], []>} : vector<8x16xf32>, vector<16x16xf32>, vector<8x16xf32> -> vector<8x16xf32>
    %53 = tpu.concatenate %35, %52 in 1 : vector<8x16xf32>, vector<8x16xf32> -> vector<8x32xf32>
    %c0_29 = arith.constant 0 : index
    %c0_30 = arith.constant 0 : index
    %54 = vector.load %arg9[%c0_29, %c0_30] : memref<32x32xf32, #tpu.memory_space<vmem>>, vector<32x32xf32>
    %cst_31 = arith.constant dense<0.000000e+00> : vector<8x32xf32>
    %55 = tpu.matmul %53, %54, %cst_31 {dimension_numbers = #tpu.dot_dimension_numbers<[1], [0], [0], [1], [0, 0, 1, 1], [], []>} : vector<8x32xf32>, vector<32x32xf32>, vector<8x32xf32> -> vector<8x32xf32>
    %c0_32 = arith.constant 0 : index
    %c0_33 = arith.constant 0 : index
    %56 = vector.load %arg10[%c0_32, %c0_33] : memref<1x32xf32, #tpu.memory_space<vmem>>, vector<1x32xf32>
    %57 = vector.broadcast %56 : vector<1x32xf32> to vector<8x32xf32>
    %58 = arith.addf %55, %57 : vector<8x32xf32>
    %c0_34 = arith.constant 0 : index
    %c0_35 = arith.constant 0 : index
    %59 = vector.load %arg11[%c0_34, %c0_35] : memref<32x32xf32, #tpu.memory_space<vmem>>, vector<32x32xf32>
    %cst_36 = arith.constant dense<0.000000e+00> : vector<8x32xf32>
    %60 = tpu.matmul %58, %59, %cst_36 {dimension_numbers = #tpu.dot_dimension_numbers<[1], [0], [0], [1], [0, 0, 1, 1], [], []>} : vector<8x32xf32>, vector<32x32xf32>, vector<8x32xf32> -> vector<8x32xf32>
    %c0_37 = arith.constant 0 : index
    %c0_38 = arith.constant 0 : index
    %61 = vector.load %arg12[%c0_37, %c0_38] : memref<1x32xf32, #tpu.memory_space<vmem>>, vector<1x32xf32>
    %62 = vector.broadcast %61 : vector<1x32xf32> to vector<8x32xf32>
    %63 = arith.addf %60, %62 : vector<8x32xf32>
    %cst_39 = arith.constant 0.000000e+00 : f32
    %64 = vector.broadcast %cst_39 : f32 to vector<8x32xf32>
    %65 = arith.maximumf %63, %64 : vector<8x32xf32>
    %66 = math.absf %63 : vector<8x32xf32>
    %cst_40 = arith.constant 0.000000e+00 : f32
    %67 = vector.broadcast %cst_40 : f32 to vector<8x32xf32>
    %68 = arith.subf %67, %66 : vector<8x32xf32>
    %69 = math.exp %68 : vector<8x32xf32>
    %70 = math.log1p %69 : vector<8x32xf32>
    %71 = arith.addf %65, %70 : vector<8x32xf32>
    %72 = math.tanh %71 : vector<8x32xf32>
    %73 = arith.mulf %63, %72 : vector<8x32xf32>
    %c0_41 = arith.constant 0 : index
    %c0_42 = arith.constant 0 : index
    %74 = vector.load %arg13[%c0_41, %c0_42] : memref<32x32xf32, #tpu.memory_space<vmem>>, vector<32x32xf32>
    %cst_43 = arith.constant dense<0.000000e+00> : vector<8x32xf32>
    %75 = tpu.matmul %73, %74, %cst_43 {dimension_numbers = #tpu.dot_dimension_numbers<[1], [0], [0], [1], [0, 0, 1, 1], [], []>} : vector<8x32xf32>, vector<32x32xf32>, vector<8x32xf32> -> vector<8x32xf32>
    %c0_44 = arith.constant 0 : index
    %c0_45 = arith.constant 0 : index
    %76 = vector.load %arg14[%c0_44, %c0_45] : memref<1x32xf32, #tpu.memory_space<vmem>>, vector<1x32xf32>
    %77 = vector.broadcast %76 : vector<1x32xf32> to vector<8x32xf32>
    %78 = arith.addf %75, %77 : vector<8x32xf32>
    %cst_46 = arith.constant 0.000000e+00 : f32
    %79 = vector.broadcast %cst_46 : f32 to vector<8x32xf32>
    %80 = arith.maximumf %78, %79 : vector<8x32xf32>
    %81 = math.absf %78 : vector<8x32xf32>
    %cst_47 = arith.constant 0.000000e+00 : f32
    %82 = vector.broadcast %cst_47 : f32 to vector<8x32xf32>
    %83 = arith.subf %82, %81 : vector<8x32xf32>
    %84 = math.exp %83 : vector<8x32xf32>
    %85 = math.log1p %84 : vector<8x32xf32>
    %86 = arith.addf %80, %85 : vector<8x32xf32>
    %87 = math.tanh %86 : vector<8x32xf32>
    %88 = arith.mulf %78, %87 : vector<8x32xf32>
    %c0_48 = arith.constant 0 : index
    %c0_49 = arith.constant 0 : index
    %89 = vector.load %arg15[%c0_48, %c0_49] : memref<32x32xf32, #tpu.memory_space<vmem>>, vector<32x32xf32>
    %cst_50 = arith.constant dense<0.000000e+00> : vector<8x32xf32>
    %90 = tpu.matmul %88, %89, %cst_50 {dimension_numbers = #tpu.dot_dimension_numbers<[1], [0], [0], [1], [0, 0, 1, 1], [], []>} : vector<8x32xf32>, vector<32x32xf32>, vector<8x32xf32> -> vector<8x32xf32>
    %c0_51 = arith.constant 0 : index
    %c0_52 = arith.constant 0 : index
    %91 = vector.load %arg16[%c0_51, %c0_52] : memref<1x32xf32, #tpu.memory_space<vmem>>, vector<1x32xf32>
    %92 = vector.broadcast %91 : vector<1x32xf32> to vector<8x32xf32>
    %93 = arith.addf %90, %92 : vector<8x32xf32>
    %c0_53 = arith.constant 0 : index
    %c0_54 = arith.constant 0 : index
    %94 = vector.load %arg17[%c0_53, %c0_54] : memref<32x32xf32, #tpu.memory_space<vmem>>, vector<32x32xf32>
    %cst_55 = arith.constant dense<0.000000e+00> : vector<8x32xf32>
    %95 = tpu.matmul %88, %94, %cst_55 {dimension_numbers = #tpu.dot_dimension_numbers<[1], [0], [0], [1], [0, 0, 1, 1], [], []>} : vector<8x32xf32>, vector<32x32xf32>, vector<8x32xf32> -> vector<8x32xf32>
    %c0_56 = arith.constant 0 : index
    %c0_57 = arith.constant 0 : index
    %96 = vector.load %arg18[%c0_56, %c0_57] : memref<1x32xf32, #tpu.memory_space<vmem>>, vector<1x32xf32>
    %97 = vector.broadcast %96 : vector<1x32xf32> to vector<8x32xf32>
    %98 = arith.addf %95, %97 : vector<8x32xf32>
    %c0_58 = arith.constant 0 : index
    %c0_59 = arith.constant 0 : index
    %99 = vector.load %arg19[%c0_58, %c0_59] : memref<32x32xf32, #tpu.memory_space<vmem>>, vector<32x32xf32>
    %cst_60 = arith.constant dense<0.000000e+00> : vector<8x32xf32>
    %100 = tpu.matmul %88, %99, %cst_60 {dimension_numbers = #tpu.dot_dimension_numbers<[1], [0], [0], [1], [0, 0, 1, 1], [], []>} : vector<8x32xf32>, vector<32x32xf32>, vector<8x32xf32> -> vector<8x32xf32>
    %c0_61 = arith.constant 0 : index
    %c0_62 = arith.constant 0 : index
    %101 = vector.load %arg20[%c0_61, %c0_62] : memref<1x32xf32, #tpu.memory_space<vmem>>, vector<1x32xf32>
    %102 = vector.broadcast %101 : vector<1x32xf32> to vector<8x32xf32>
    %103 = arith.addf %100, %102 : vector<8x32xf32>
    %104 = vector.extract_strided_slice %93 {offsets = [0, 0], sizes = [8, 16], strides = [1, 1]} : vector<8x32xf32> to vector<8x16xf32>
    %105 = vector.extract_strided_slice %98 {offsets = [0, 0], sizes = [8, 16], strides = [1, 1]} : vector<8x32xf32> to vector<8x16xf32>
    %cst_63 = arith.constant dense<0.000000e+00> : vector<8x8xf32>
    %106 = tpu.matmul %104, %105, %cst_63 {dimension_numbers = #tpu.dot_dimension_numbers<[1], [1], [0], [0], [0, 0, 1, 0], [], []>} : vector<8x16xf32>, vector<8x16xf32>, vector<8x8xf32> -> vector<8x8xf32>
    %cst_64 = arith.constant 2.500000e-01 : f32
    %107 = vector.broadcast %cst_64 : f32 to vector<8x8xf32>
    %108 = arith.mulf %106, %107 : vector<8x8xf32>
    %cst_65 = arith.constant dense<0xFF800000> : vector<8xf32>
    %109 = vector.multi_reduction <maximumf>, %108, %cst_65 [1] : vector<8x8xf32> to vector<8xf32>
    %110 = vector.shape_cast %109 : vector<8xf32> to vector<8x1xf32>
    %111 = vector.broadcast %110 : vector<8x1xf32> to vector<8x8xf32>
    %112 = arith.subf %108, %111 : vector<8x8xf32>
    %113 = math.exp %112 : vector<8x8xf32>
    %cst_66 = arith.constant dense<0.000000e+00> : vector<8xf32>
    %114 = vector.multi_reduction <add>, %113, %cst_66 [1] : vector<8x8xf32> to vector<8xf32>
    %115 = vector.shape_cast %114 : vector<8xf32> to vector<8x1xf32>
    %116 = tpu.reciprocal %115 : vector<8x1xf32> -> vector<8x1xf32>
    %117 = vector.broadcast %116 : vector<8x1xf32> to vector<8x8xf32>
    %118 = arith.mulf %113, %117 : vector<8x8xf32>
    %119 = vector.extract_strided_slice %103 {offsets = [0, 0], sizes = [8, 16], strides = [1, 1]} : vector<8x32xf32> to vector<8x16xf32>
    %cst_67 = arith.constant dense<0.000000e+00> : vector<8x16xf32>
    %120 = tpu.matmul %118, %119, %cst_67 {dimension_numbers = #tpu.dot_dimension_numbers<[1], [0], [0], [1], [0, 0, 1, 1], [], []>} : vector<8x8xf32>, vector<8x16xf32>, vector<8x16xf32> -> vector<8x16xf32>
    %121 = vector.extract_strided_slice %93 {offsets = [0, 16], sizes = [8, 16], strides = [1, 1]} : vector<8x32xf32> to vector<8x16xf32>
    %122 = vector.extract_strided_slice %98 {offsets = [0, 16], sizes = [8, 16], strides = [1, 1]} : vector<8x32xf32> to vector<8x16xf32>
    %cst_68 = arith.constant dense<0.000000e+00> : vector<8x8xf32>
    %123 = tpu.matmul %121, %122, %cst_68 {dimension_numbers = #tpu.dot_dimension_numbers<[1], [1], [0], [0], [0, 0, 1, 0], [], []>} : vector<8x16xf32>, vector<8x16xf32>, vector<8x8xf32> -> vector<8x8xf32>
    %cst_69 = arith.constant 2.500000e-01 : f32
    %124 = vector.broadcast %cst_69 : f32 to vector<8x8xf32>
    %125 = arith.mulf %123, %124 : vector<8x8xf32>
    %cst_70 = arith.constant dense<0xFF800000> : vector<8xf32>
    %126 = vector.multi_reduction <maximumf>, %125, %cst_70 [1] : vector<8x8xf32> to vector<8xf32>
    %127 = vector.shape_cast %126 : vector<8xf32> to vector<8x1xf32>
    %128 = vector.broadcast %127 : vector<8x1xf32> to vector<8x8xf32>
    %129 = arith.subf %125, %128 : vector<8x8xf32>
    %130 = math.exp %129 : vector<8x8xf32>
    %cst_71 = arith.constant dense<0.000000e+00> : vector<8xf32>
    %131 = vector.multi_reduction <add>, %130, %cst_71 [1] : vector<8x8xf32> to vector<8xf32>
    %132 = vector.shape_cast %131 : vector<8xf32> to vector<8x1xf32>
    %133 = tpu.reciprocal %132 : vector<8x1xf32> -> vector<8x1xf32>
    %134 = vector.broadcast %133 : vector<8x1xf32> to vector<8x8xf32>
    %135 = arith.mulf %130, %134 : vector<8x8xf32>
    %136 = vector.extract_strided_slice %103 {offsets = [0, 16], sizes = [8, 16], strides = [1, 1]} : vector<8x32xf32> to vector<8x16xf32>
    %cst_72 = arith.constant dense<0.000000e+00> : vector<8x16xf32>
    %137 = tpu.matmul %135, %136, %cst_72 {dimension_numbers = #tpu.dot_dimension_numbers<[1], [0], [0], [1], [0, 0, 1, 1], [], []>} : vector<8x8xf32>, vector<8x16xf32>, vector<8x16xf32> -> vector<8x16xf32>
    %138 = tpu.concatenate %120, %137 in 1 : vector<8x16xf32>, vector<8x16xf32> -> vector<8x32xf32>
    %c0_73 = arith.constant 0 : index
    %c0_74 = arith.constant 0 : index
    %139 = vector.load %arg21[%c0_73, %c0_74] : memref<32x32xf32, #tpu.memory_space<vmem>>, vector<32x32xf32>
    %cst_75 = arith.constant dense<0.000000e+00> : vector<8x32xf32>
    %140 = tpu.matmul %138, %139, %cst_75 {dimension_numbers = #tpu.dot_dimension_numbers<[1], [0], [0], [1], [0, 0, 1, 1], [], []>} : vector<8x32xf32>, vector<32x32xf32>, vector<8x32xf32> -> vector<8x32xf32>
    %c0_76 = arith.constant 0 : index
    %c0_77 = arith.constant 0 : index
    %141 = vector.load %arg22[%c0_76, %c0_77] : memref<1x32xf32, #tpu.memory_space<vmem>>, vector<1x32xf32>
    %142 = vector.broadcast %141 : vector<1x32xf32> to vector<8x32xf32>
    %143 = arith.addf %140, %142 : vector<8x32xf32>
    %c0_78 = arith.constant 0 : index
    %c0_79 = arith.constant 0 : index
    %144 = vector.load %arg23[%c0_78, %c0_79] : memref<32x32xf32, #tpu.memory_space<vmem>>, vector<32x32xf32>
    %cst_80 = arith.constant dense<0.000000e+00> : vector<8x32xf32>
    %145 = tpu.matmul %143, %144, %cst_80 {dimension_numbers = #tpu.dot_dimension_numbers<[1], [0], [0], [1], [0, 0, 1, 1], [], []>} : vector<8x32xf32>, vector<32x32xf32>, vector<8x32xf32> -> vector<8x32xf32>
    %c0_81 = arith.constant 0 : index
    %c0_82 = arith.constant 0 : index
    %146 = vector.load %arg24[%c0_81, %c0_82] : memref<1x32xf32, #tpu.memory_space<vmem>>, vector<1x32xf32>
    %147 = vector.broadcast %146 : vector<1x32xf32> to vector<8x32xf32>
    %148 = arith.addf %145, %147 : vector<8x32xf32>
    %cst_83 = arith.constant 0.000000e+00 : f32
    %149 = vector.broadcast %cst_83 : f32 to vector<8x32xf32>
    %150 = arith.maximumf %148, %149 : vector<8x32xf32>
    %151 = math.absf %148 : vector<8x32xf32>
    %cst_84 = arith.constant 0.000000e+00 : f32
    %152 = vector.broadcast %cst_84 : f32 to vector<8x32xf32>
    %153 = arith.subf %152, %151 : vector<8x32xf32>
    %154 = math.exp %153 : vector<8x32xf32>
    %155 = math.log1p %154 : vector<8x32xf32>
    %156 = arith.addf %150, %155 : vector<8x32xf32>
    %157 = math.tanh %156 : vector<8x32xf32>
    %158 = arith.mulf %148, %157 : vector<8x32xf32>
    %c0_85 = arith.constant 0 : index
    %c0_86 = arith.constant 0 : index
    %159 = vector.load %arg25[%c0_85, %c0_86] : memref<32x32xf32, #tpu.memory_space<vmem>>, vector<32x32xf32>
    %cst_87 = arith.constant dense<0.000000e+00> : vector<8x32xf32>
    %160 = tpu.matmul %158, %159, %cst_87 {dimension_numbers = #tpu.dot_dimension_numbers<[1], [0], [0], [1], [0, 0, 1, 1], [], []>} : vector<8x32xf32>, vector<32x32xf32>, vector<8x32xf32> -> vector<8x32xf32>
    %c0_88 = arith.constant 0 : index
    %c0_89 = arith.constant 0 : index
    %161 = vector.load %arg26[%c0_88, %c0_89] : memref<1x32xf32, #tpu.memory_space<vmem>>, vector<1x32xf32>
    %162 = vector.broadcast %161 : vector<1x32xf32> to vector<8x32xf32>
    %163 = arith.addf %160, %162 : vector<8x32xf32>
    %cst_90 = arith.constant 0.000000e+00 : f32
    %164 = vector.broadcast %cst_90 : f32 to vector<8x32xf32>
    %165 = arith.maximumf %163, %164 : vector<8x32xf32>
    %166 = math.absf %163 : vector<8x32xf32>
    %cst_91 = arith.constant 0.000000e+00 : f32
    %167 = vector.broadcast %cst_91 : f32 to vector<8x32xf32>
    %168 = arith.subf %167, %166 : vector<8x32xf32>
    %169 = math.exp %168 : vector<8x32xf32>
    %170 = math.log1p %169 : vector<8x32xf32>
    %171 = arith.addf %165, %170 : vector<8x32xf32>
    %172 = math.tanh %171 : vector<8x32xf32>
    %173 = arith.mulf %163, %172 : vector<8x32xf32>
    %c0_92 = arith.constant 0 : index
    %c0_93 = arith.constant 0 : index
    %c0_94 = arith.constant 0 : index
    %174 = vector.load %arg27[%c0_92, %c0_93, %c0_94] : memref<1x8x32xf32, #tpu.memory_space<vmem>>, vector<1x8x32xf32>
    %175 = vector.shape_cast %174 : vector<1x8x32xf32> to vector<8x32xf32>
    %176 = vector.shape_cast %173 : vector<8x32xf32> to vector<1x8x32xf32>
    tpu.vector_store %arg27[%c0_92, %c0_93, %c0_94], %176 {strides = array<i32>} : memref<1x8x32xf32, #tpu.memory_space<vmem>>, vector<1x8x32xf32>,
    return
  }
  func.func @transform_0(%arg0: i32) -> (i32, i32, i32) {
    %c0_i32 = arith.constant 0 : i32
    %c0_i32_0 = arith.constant 0 : i32
    %c0_i32_1 = arith.constant 0 : i32
    return %arg0, %c0_i32, %c0_i32_0 : i32, i32, i32
  }
  func.func @transform_1(%arg0: i32) -> (i32, i32, i32) {
    %c0_i32 = arith.constant 0 : i32
    %c0_i32_0 = arith.constant 0 : i32
    %c0_i32_1 = arith.constant 0 : i32
    return %arg0, %c0_i32, %c0_i32_0 : i32, i32, i32
  }
  func.func @transform_2(%arg0: i32) -> (i32, i32) {
    %c0_i32 = arith.constant 0 : i32
    %c0_i32_0 = arith.constant 0 : i32
    %c0_i32_1 = arith.constant 0 : i32
    return %c0_i32, %c0_i32_0 : i32, i32
  }
  func.func @transform_3(%arg0: i32) -> (i32, i32) {
    %c0_i32 = arith.constant 0 : i32
    %c0_i32_0 = arith.constant 0 : i32
    %c0_i32_1 = arith.constant 0 : i32
    return %c0_i32, %c0_i32_0 : i32, i32
  }
  func.func @transform_4(%arg0: i32) -> (i32, i32) {
    %c0_i32 = arith.constant 0 : i32
    %c0_i32_0 = arith.constant 0 : i32
    %c0_i32_1 = arith.constant 0 : i32
    return %c0_i32, %c0_i32_0 : i32, i32
  }
  func.func @transform_5(%arg0: i32) -> (i32, i32) {
    %c0_i32 = arith.constant 0 : i32
    %c0_i32_0 = arith.constant 0 : i32
    %c0_i32_1 = arith.constant 0 : i32
    return %c0_i32, %c0_i32_0 : i32, i32
  }
  func.func @transform_6(%arg0: i32) -> (i32, i32) {
    %c0_i32 = arith.constant 0 : i32
    %c0_i32_0 = arith.constant 0 : i32
    %c0_i32_1 = arith.constant 0 : i32
    return %c0_i32, %c0_i32_0 : i32, i32
  }
  func.func @transform_7(%arg0: i32) -> (i32, i32) {
    %c0_i32 = arith.constant 0 : i32
    %c0_i32_0 = arith.constant 0 : i32
    %c0_i32_1 = arith.constant 0 : i32
    return %c0_i32, %c0_i32_0 : i32, i32
  }
  func.func @transform_8(%arg0: i32) -> (i32, i32) {
    %c0_i32 = arith.constant 0 : i32
    %c0_i32_0 = arith.constant 0 : i32
    %c0_i32_1 = arith.constant 0 : i32
    return %c0_i32, %c0_i32_0 : i32, i32
  }
  func.func @transform_9(%arg0: i32) -> (i32, i32) {
    %c0_i32 = arith.constant 0 : i32
    %c0_i32_0 = arith.constant 0 : i32
    %c0_i32_1 = arith.constant 0 : i32
    return %c0_i32, %c0_i32_0 : i32, i32
  }
  func.func @transform_10(%arg0: i32) -> (i32, i32) {
    %c0_i32 = arith.constant 0 : i32
    %c0_i32_0 = arith.constant 0 : i32
    %c0_i32_1 = arith.constant 0 : i32
    return %c0_i32, %c0_i32_0 : i32, i32
  }
  func.func @transform_11(%arg0: i32) -> (i32, i32) {
    %c0_i32 = arith.constant 0 : i32
    %c0_i32_0 = arith.constant 0 : i32
    %c0_i32_1 = arith.constant 0 : i32
    return %c0_i32, %c0_i32_0 : i32, i32
  }
  func.func @transform_12(%arg0: i32) -> (i32, i32) {
    %c0_i32 = arith.constant 0 : i32
    %c0_i32_0 = arith.constant 0 : i32
    %c0_i32_1 = arith.constant 0 : i32
    return %c0_i32, %c0_i32_0 : i32, i32
  }
  func.func @transform_13(%arg0: i32) -> (i32, i32) {
    %c0_i32 = arith.constant 0 : i32
    %c0_i32_0 = arith.constant 0 : i32
    %c0_i32_1 = arith.constant 0 : i32
    return %c0_i32, %c0_i32_0 : i32, i32
  }
  func.func @transform_14(%arg0: i32) -> (i32, i32) {
    %c0_i32 = arith.constant 0 : i32
    %c0_i32_0 = arith.constant 0 : i32
    %c0_i32_1 = arith.constant 0 : i32
    return %c0_i32, %c0_i32_0 : i32, i32
  }
  func.func @transform_15(%arg0: i32) -> (i32, i32) {
    %c0_i32 = arith.constant 0 : i32
    %c0_i32_0 = arith.constant 0 : i32
    %c0_i32_1 = arith.constant 0 : i32
    return %c0_i32, %c0_i32_0 : i32, i32
  }
  func.func @transform_16(%arg0: i32) -> (i32, i32) {
    %c0_i32 = arith.constant 0 : i32
    %c0_i32_0 = arith.constant 0 : i32
    %c0_i32_1 = arith.constant 0 : i32
    return %c0_i32, %c0_i32_0 : i32, i32
  }
  func.func @transform_17(%arg0: i32) -> (i32, i32) {
    %c0_i32 = arith.constant 0 : i32
    %c0_i32_0 = arith.constant 0 : i32
    %c0_i32_1 = arith.constant 0 : i32
    return %c0_i32, %c0_i32_0 : i32, i32
  }
  func.func @transform_18(%arg0: i32) -> (i32, i32) {
    %c0_i32 = arith.constant 0 : i32
    %c0_i32_0 = arith.constant 0 : i32
    %c0_i32_1 = arith.constant 0 : i32
    return %c0_i32, %c0_i32_0 : i32, i32
  }
  func.func @transform_19(%arg0: i32) -> (i32, i32) {
    %c0_i32 = arith.constant 0 : i32
    %c0_i32_0 = arith.constant 0 : i32
    %c0_i32_1 = arith.constant 0 : i32
    return %c0_i32, %c0_i32_0 : i32, i32
  }
  func.func @transform_20(%arg0: i32) -> (i32, i32) {
    %c0_i32 = arith.constant 0 : i32
    %c0_i32_0 = arith.constant 0 : i32
    %c0_i32_1 = arith.constant 0 : i32
    return %c0_i32, %c0_i32_0 : i32, i32
  }
  func.func @transform_21(%arg0: i32) -> (i32, i32) {
    %c0_i32 = arith.constant 0 : i32
    %c0_i32_0 = arith.constant 0 : i32
    %c0_i32_1 = arith.constant 0 : i32
    return %c0_i32, %c0_i32_0 : i32, i32
  }
  func.func @transform_22(%arg0: i32) -> (i32, i32) {
    %c0_i32 = arith.constant 0 : i32
    %c0_i32_0 = arith.constant 0 : i32
    %c0_i32_1 = arith.constant 0 : i32
    return %c0_i32, %c0_i32_0 : i32, i32
  }
  func.func @transform_23(%arg0: i32) -> (i32, i32) {
    %c0_i32 = arith.constant 0 : i32
    %c0_i32_0 = arith.constant 0 : i32
    %c0_i32_1 = arith.constant 0 : i32
    return %c0_i32, %c0_i32_0 : i32, i32
  }
  func.func @transform_24(%arg0: i32) -> (i32, i32) {
    %c0_i32 = arith.constant 0 : i32
    %c0_i32_0 = arith.constant 0 : i32
    %c0_i32_1 = arith.constant 0 : i32
    return %c0_i32, %c0_i32_0 : i32, i32
  }
  func.func @transform_25(%arg0: i32) -> (i32, i32) {
    %c0_i32 = arith.constant 0 : i32
    %c0_i32_0 = arith.constant 0 : i32
    %c0_i32_1 = arith.constant 0 : i32
    return %c0_i32, %c0_i32_0 : i32, i32
  }
  func.func @transform_26(%arg0: i32) -> (i32, i32, i32) {
    %c0_i32 = arith.constant 0 : i32
    %c0_i32_0 = arith.constant 0 : i32
    %c0_i32_1 = arith.constant 0 : i32
    return %arg0, %c0_i32, %c0_i32_0 : i32, i32, i32
  }
}

</mosaic_0001>

<bundles_post_ra>
// kernel: tpu_custom_call.1
= control target key start
LH: loop header
LB: loop body
LE: loop exit
PB: predicated region body
PF: predicated region fallthrough
CT: control target
= control target key end

     0   :  { %s5520_s0 = inlined_call_operand.hbm [shape: f32[2,8,32], index: 0, kind: input, shape index: {}]   ;;  %s5521_s1 = inlined_call_operand.hbm [shape: f32[2,16,32], index: 1, kind: input, shape index: {}]   ;;  %s5522_s2 = inlined_call_operand.hbm [shape: f32[32,32], index: 2, kind: input, shape index: {}]   ;;  %s5523_s3 = inlined_call_operand.hbm [shape: f32[1,32], index: 3, kind: input, shape index: {}]   ;;  %s5524_s4 = inlined_call_operand.hbm [shape: f32[32,32], index: 4, kind: input, shape index: {}]   ;;  %s5525_s5 = inlined_call_operand.hbm [shape: f32[1,32], index: 5, kind: input, shape index: {}]   ;;  %s5526_s6 = inlined_call_operand.hbm [shape: f32[32,32], index: 6, kind: input, shape index: {}]   ;;  %s5527_s7 = inlined_call_operand.hbm [shape: f32[1,32], index: 7, kind: input, shape index: {}]   ;;  %s5528_s8 = inlined_call_operand.hbm [shape: f32[32,32], index: 8, kind: input, shape index: {}]   ;;  %s5529_s9 = inlined_call_operand.hbm [shape: f32[1,32], index: 9, kind: input, shape index: {}]   ;;  %s5530_s10 = inlined_call_operand.vmem [shape: f32[32,32], index: 10, kind: input, shape index: {}]   ;;  %s5531_s11 = inlined_call_operand.hbm [shape: f32[1,32], index: 11, kind: input, shape index: {}]   ;;  %s5532_s12 = inlined_call_operand.hbm [shape: f32[32,32], index: 12, kind: input, shape index: {}]   ;;  %s5533_s13 = inlined_call_operand.hbm [shape: f32[1,32], index: 13, kind: input, shape index: {}]   ;;  %s5534_s14 = inlined_call_operand.hbm [shape: f32[32,32], index: 14, kind: input, shape index: {}]   ;;  %s5535_s15 = inlined_call_operand.hbm [shape: f32[1,32], index: 15, kind: input, shape index: {}]   ;;  %s5536_s16 = inlined_call_operand.hbm [shape: f32[32,32], index: 16, kind: input, shape index: {}]   ;;  %s5537_s17 = inlined_call_operand.hbm [shape: f32[1,32], index: 17, kind: input, shape index: {}]   ;;  %s5538_s18 = inlined_call_operand.vmem [shape: f32[32,32], index: 18, kind: input, shape index: {}]   ;;  %s5539_s19 = inlined_call_operand.vmem [shape: f32[1,32], index: 19, kind: input, shape index: {}]   ;;  %s5540_s20 = inlined_call_operand.hbm [shape: f32[32,32], index: 20, kind: input, shape index: {}]   ;;  %s5541_s21 = inlined_call_operand.vmem [shape: f32[1,32], index: 21, kind: input, shape index: {}]   ;;  %s5542_s22 = inlined_call_operand.hbm [shape: f32[32,32], index: 22, kind: input, shape index: {}]   ;;  %s5543_s23 = inlined_call_operand.vmem [shape: f32[1,32], index: 23, kind: input, shape index: {}]   ;;  %s5544_s24 = inlined_call_operand.hbm [shape: f32[32,32], index: 24, kind: input, shape index: {}]   ;;  %s5545_s25 = inlined_call_operand.vmem [shape: f32[1,32], index: 25, kind: input, shape index: {}]   ;;  %s5546_s26 = inlined_call_operand.hbm [shape: f32[2,8,32], index: 26, kind: output, shape index: {}]  }
   0x1   :  { %5578 = sst [smem:[#allocation51_spill]] %s5520_s0 }
   0x2   :  { %5579 = sst [smem:[#allocation52_spill]] %s5521_s1 }
   0x3   :  { %5580 = sst [smem:[#allocation53_spill]] %s5522_s2 }
   0x4   :  { %5581 = sst [smem:[#allocation54_spill]] %s5523_s3 }
   0x5   :  { %5582 = sst [smem:[#allocation55_spill]] %s5524_s4 }
   0x6   :  { %5583 = sst [smem:[#allocation56_spill]] %s5525_s5 }
   0x7   :  { %5584 = sst [smem:[#allocation57_spill]] %s5526_s6 }
   0x8   :  { %5585 = sst [smem:[#allocation58_spill]] %s5527_s7 }
   0x9   :  { %5586 = sst [smem:[#allocation59_spill]] %s5528_s8 }
   0xa   :  { %5587 = sst [smem:[#allocation60_spill]] %s5529_s9 }
   0xb   :  { %5588 = sst [smem:[#allocation61_spill]] %s5530_s10 }
   0xc   :  { %5589 = sst [smem:[#allocation62_spill]] %s5531_s11 }
   0xd   :  { %5590 = sst [smem:[#allocation63_spill]] %s5532_s12 }
   0xe   :  { %5591 = sst [smem:[#allocation64_spill]] %s5533_s13 }
   0xf   :  { %5592 = sst [smem:[#allocation65_spill]] %s5534_s14 }
  0x10   :  { %5593 = sst [smem:[#allocation66_spill]] %s5535_s15 }
  0x11   :  { %5594 = sst [smem:[#allocation67_spill]] %s5536_s16 }
  0x12   :  { %5595 = sst [smem:[#allocation68_spill]] %s5537_s17 }
  0x13   :  { %5596 = sst [smem:[#allocation69_spill]] %s5538_s18 }
  0x14   :  { %5597 = sst [smem:[#allocation70_spill]] %s5539_s19 }
  0x15   :  { %5598 = sst [smem:[#allocation71_spill]] %s5541_s21 }
  0x16   :  { %5599 = sst [smem:[#allocation72_spill]] %s5543_s23 }
  0x17   :  { %5600 = sst [smem:[#allocation73_spill]] %s5545_s25 }
  0x18   :  { %5601 = sst [smem:[#allocation74_spill]] %s5546_s26 }
  0x19   :  { %31 = vsyncpa [#allocation3], 0 }
  0x1a   :  { %33 = vsyncpa [#allocation3 + $0x1], 0 }
  0x1b   :  { %34 = vsyncpa [#allocation6], 0 }
  0x1c   :  { %36 = vsyncpa [#allocation6 + $0x1], 0 }
  0x1d   :  { %37 = vsyncpa [#allocation9], 0 }
  0x1e   :  { %38 = vsyncpa [#allocation12], 0 }
  0x1f   :  { %39 = vsyncpa [#allocation15], 0 }
  0x20   :  { %40 = vsyncpa [#allocation18], 0 }
  0x21   :  { %41 = vsyncpa [#allocation21], 0 }
  0x22   :  { %42 = vsyncpa [#allocation24], 0 }
  0x23   :  { %43 = vsyncpa [#allocation27], 0 }
  0x24   :  { %44 = vsyncpa [#allocation30], 0 }
  0x25   :  { %45 = vsyncpa [#allocation33], 0 }
  0x26   :  { %46 = vsyncpa [#allocation4], 0 }
  0x27   :  { %48 = vsyncpa [#allocation4 + $0x1], 0  ;;  %s4707_s27 = smov 0   ;;  %s4709_s3 = smov 0  }
  0x28   :  { %s4711_s7 = smov 0   ;;  %s4713_s28 = smov 0  }
  0x29 LB: > { %5602 = sst [smem:[#allocation48_spill]] %s4530_s27  ;;  %s4544_s8 = smov [#allocation7]   ;;  %s4542_s28 = sphi %s4713_s28, %s5675_s28   ;;  %s4538_s7 = sphi %s4711_s7, %s5674_s7   ;;  %s4534_s3 = sphi %s4709_s3, %s5673_s3   ;;  %s4530_s27 = sphi %s4707_s27, %s5672_s27  }
  0x2a   : > { %s653_s4 = sshll.u32 %s4544_s8, 4  ;;  %s4728_s29 = sadd.s32 4294967295, %s4542_s28   ;;  %s4733_s4 = int_to_ptr.vmem [resolvable:$true] %s653_s4 }
  0x2b   : > { %5603 = sst [smem:[#allocation49_spill]] %s4728_s29  ;;  %p3135_p0 = scmp.ge.s32.totalorder %s4542_s28, 1 }
  0x2c   : > { %p5569_p1 = scmp.eq.s32.totalorder %s4728_s29, 0  ;;  %p641_p2 = scmp.lt.s32.totalorder %s4542_s28, 3 }
  0x2d   : > { %s4545_s9 = smov [#allocation8]   ;;  %s4546_s5 = smov [#allocation11]  }
  0x2e   : > { %p4735_p3 = pnand %p3135_p0, %p641_p2  ;;  %s667_s30 = sshll.u32 %s4545_s9, 4  ;;  %s4748_s30 = int_to_ptr.vmem [resolvable:$true] %s667_s30 }
  0x2f   : > { %s691_s10 = sshll.u32 %s4546_s5, 4  ;;  %s5607_s8 = sld [smem:[#allocation53_spill]]  ;;  %s4750_s10 = int_to_ptr.vmem [resolvable:$true] %s691_s10 }
  0x30   : > { %s5604_s0 = scalar_select %p4735_p3, 1, 0 }
  0x31   : > { %p3657_p5 = pneg %p4735_p3 }
  0x32   : > { %5605 = sst [smem:[#allocation50_spill]] %s5604_s0 }
  0x33   : > { %p4744_p6 = pnand %p3657_p5, %p5569_p1 }
  0x35   : > { %s3868_s26 = scalar_lea.hbm %s5607_s8, 512  ;;  %p4760_p8 = pneg %p4744_p6 }
  0x36   : > { %p3869_p7 = scmp.ne.s32.totalorder %s5607_s8, %s3868_s26  ;;  %p3875_p11 = scmp.lt.u32.totalorder %s3868_s26, %s5607_s8 }
  0x38   : > { %p3871_p9 = pnand %p4760_p8, %p3869_p7 }
  0x3a   : > { %p3872_p10 = pneg %p3871_p9 }
  0x3c   : > { %p3877_p12 = pnand %p3875_p11, %p3872_p10 }
  0x3e   : > { %3880 = shalt.err (!%p3877_p12)
}
  0x3f   : > { %s3881_s23 = scalar_lea.vmem %s4733_s4, 512  ;;  %p3889_p5 = scmp.lt.s32.totalorder %s4733_s4, %s4733_s4 }
  0x40   : > { %p3882_p13 = scmp.ne.s32.totalorder %s4733_s4, %s3881_s23  ;;  %p3890_p4 = scmp.lt.s32.totalorder %s3881_s23, %s3881_s23 }
  0x42   : > { %p3884_p0 = pnand %p3882_p13, %p4760_p8  ;;  %p3891_p7 = por %p3890_p4, %p3889_p5 }
  0x44   : > { %p3885_p2 = pneg %p3884_p0 }
  0x46   : > { %p3892_p9 = pnand %p3891_p7, %p3885_p2 }
  0x48   : > { %3895 = shalt.err (!%p3892_p9)
}
  0x49   : > { %s5564_s25 = smov 128   ;;  %s5566_s21 = smov 8  }
  0x4a   : > { %3660 = dma.hbm_to_vmem [thread:$0]  (!%p4744_p6), %s5607_s8, 512, %s4733_s4, [#allocation6], %s5564_s25, %s5564_s25, %s5566_s21  }
  0x4b   : > { %s5609_s19 = sld [smem:[#allocation54_spill]] }
  0x51   : > { %s3896_s23 = scalar_lea.hbm %s5609_s19, 16 }
  0x52   : > { %p3897_p4 = scmp.ne.s32.totalorder %s5609_s19, %s3896_s23  ;;  %p3903_p12 = scmp.lt.u32.totalorder %s3896_s23, %s5609_s19 }
  0x54   : > { %p3899_p10 = pnand %p3897_p4, %p4760_p8 }
  0x56   : > { %p3900_p11 = pneg %p3899_p10 }
  0x58   : > { %p3905_p13 = pnand %p3903_p12, %p3900_p11 }
  0x5a   : > { %3908 = shalt.err (!%p3905_p13)
}
  0x5b   : > { %s3909_s4 = scalar_lea.vmem %s4748_s30, 16  ;;  %s3916_s18 = scalar_lea.vmem %s4748_s30, 32 }
  0x5c   : > { %p3910_p0 = scmp.ne.s32.totalorder %s4748_s30, %s3909_s4  ;;  %p3917_p7 = scmp.lt.s32.totalorder %s4748_s30, %s4748_s30 }
  0x5d   : > { %p3918_p9 = scmp.lt.s32.totalorder %s3916_s18, %s3909_s4 }
  0x5e   : > { %p3912_p2 = pnand %p3910_p0, %p4760_p8 }
  0x5f   : > { %p3919_p4 = por %p3918_p9, %p3917_p7 }
  0x60   : > { %p3913_p5 = pneg %p3912_p2 }
  0x62   : > { %p3920_p10 = pnand %p3919_p4, %p3913_p5 }
  0x64   : > { %3923 = shalt.err (!%p3920_p10)
}
  0x65   : > { %3663 = dma.hbm_to_vmem [thread:$0]  (!%p4744_p6), %s5609_s19, 16, %s4748_s30, [#allocation9]  }
  0x66   : > { %s5610_s6 = sld [smem:[#allocation56_spill]] }
  0x6c   : > { %s3924_s1 = scalar_lea.hbm %s5610_s6, 16 }
  0x6d   : > { %p3925_p11 = scmp.ne.s32.totalorder %s5610_s6, %s3924_s1  ;;  %p3931_p0 = scmp.lt.u32.totalorder %s3924_s1, %s5610_s6 }
  0x6f   : > { %p3927_p12 = pnand %p3925_p11, %p4760_p8 }
  0x71   : > { %p3928_p13 = pneg %p3927_p12 }
  0x73   : > { %p3933_p2 = pnand %p3931_p0, %p3928_p13 }
  0x75   : > { %3936 = shalt.err (!%p3933_p2)
}
  0x76   : > { %s3937_s30 = scalar_lea.vmem %s4750_s10, 16  ;;  %s3944_s27 = scalar_lea.vmem %s4750_s10, 32 }
  0x77   : > { %p3938_p5 = scmp.ne.s32.totalorder %s4750_s10, %s3937_s30  ;;  %p3945_p4 = scmp.lt.s32.totalorder %s4750_s10, %s4750_s10 }
  0x78   : > { %p3946_p10 = scmp.lt.s32.totalorder %s3944_s27, %s3937_s30 }
  0x79   : > { %p3940_p7 = pnand %p3938_p5, %p4760_p8 }
  0x7a   : > { %p3947_p11 = por %p3946_p10, %p3945_p4 }
  0x7b   : > { %p3941_p9 = pneg %p3940_p7 }
  0x7d   : > { %p3948_p12 = pnand %p3947_p11, %p3941_p9 }
  0x7f   : > { %3951 = shalt.err (!%p3948_p12)
}
  0x80   : > { %3669 = dma.hbm_to_vmem [thread:$0]  (!%p4744_p6), %s5610_s6, 16, %s4750_s10, [#allocation12]  }
  0x81   : > { %s4549_s26 = smov [#allocation14]   ;;  %s4550_s5 = smov [#allocation17]  }
  0x82   : > { %s715_s1 = sshll.u32 %s4549_s26, 4  ;;  %s739_s23 = sshll.u32 %s4550_s5, 4  ;;  %s716_s1 = int_to_ptr.vmem [resolvable:$true] %s715_s1  ;;  %s740_s23 = int_to_ptr.vmem [resolvable:$true] %s739_s23 }
  0x83   : > { %s5611_s25 = sld [smem:[#allocation58_spill]] }
  0x89   : > { %s3952_s30 = scalar_lea.hbm %s5611_s25, 16 }
  0x8a   : > { %p3953_p13 = scmp.ne.s32.totalorder %s5611_s25, %s3952_s30  ;;  %p3959_p5 = scmp.lt.u32.totalorder %s3952_s30, %s5611_s25 }
  0x8c   : > { %p3955_p0 = pnand %p3953_p13, %p4760_p8 }
  0x8e   : > { %p3956_p2 = pneg %p3955_p0 }
  0x90   : > { %p3961_p7 = pnand %p3959_p5, %p3956_p2 }
  0x92   : > { %3964 = shalt.err (!%p3961_p7)
}
  0x93   : > { %s3965_s10 = scalar_lea.vmem %s716_s1, 16  ;;  %s3972_s0 = scalar_lea.vmem %s716_s1, 32 }
  0x94   : > { %p3966_p9 = scmp.ne.s32.totalorder %s716_s1, %s3965_s10  ;;  %p3973_p11 = scmp.lt.s32.totalorder %s716_s1, %s716_s1 }
  0x95   : > { %p3974_p12 = scmp.lt.s32.totalorder %s3972_s0, %s3965_s10 }
  0x96   : > { %p3968_p4 = pnand %p3966_p9, %p4760_p8 }
  0x97   : > { %p3975_p1 = por %p3974_p12, %p3973_p11 }
  0x98   : > { %p3969_p10 = pneg %p3968_p4 }
  0x9a   : > { %p3976_p3 = pnand %p3975_p1, %p3969_p10 }
  0x9c   : > { %3979 = shalt.err (!%p3976_p3)
}
  0x9d   : > { %3675 = dma.hbm_to_vmem [thread:$0]  (!%p4744_p6), %s5611_s25, 16, %s716_s1, [#allocation15]  }
  0x9e   : > { %s5612_s4 = sld [smem:[#allocation60_spill]] }
  0xa4   : > { %s3980_s18 = scalar_lea.hbm %s5612_s4, 16 }
  0xa5   : > { %p3981_p13 = scmp.ne.s32.totalorder %s5612_s4, %s3980_s18  ;;  %p3987_p3 = scmp.lt.u32.totalorder %s3980_s18, %s5612_s4 }
  0xa7   : > { %p3983_p0 = pnand %p3981_p13, %p4760_p8 }
  0xa9   : > { %p3984_p1 = pneg %p3983_p0 }
  0xab   : > { %p3989_p2 = pnand %p3987_p3, %p3984_p1 }
  0xad   : > { %3992 = shalt.err (!%p3989_p2)
}
  0xae   : > { %s3993_s0 = scalar_lea.vmem %s740_s23, 16  ;;  %s4000_s1 = scalar_lea.vmem %s740_s23, 32 }
  0xaf   : > { %p3994_p5 = scmp.ne.s32.totalorder %s740_s23, %s3993_s0  ;;  %p4001_p4 = scmp.lt.s32.totalorder %s740_s23, %s740_s23 }
  0xb0   : > { %p4002_p10 = scmp.lt.s32.totalorder %s4000_s1, %s3993_s0 }
  0xb1   : > { %p3996_p7 = pnand %p3994_p5, %p4760_p8 }
  0xb2   : > { %p4003_p11 = por %p4002_p10, %p4001_p4 }
  0xb3   : > { %p3997_p9 = pneg %p3996_p7 }
  0xb5   : > { %p4004_p12 = pnand %p4003_p11, %p3997_p9 }
  0xb7   : > { %4007 = shalt.err (!%p4004_p12)
}
  0xb8   : > { %3681 = dma.hbm_to_vmem [thread:$0]  (!%p4744_p6), %s5612_s4, 16, %s740_s23, [#allocation18]  }
  0xb9   : > { %s4551_s8 = smov [#allocation20]   ;;  %s4552_s18 = smov [#allocation23]  }
  0xba   : > { %s763_s5 = sshll.u32 %s4551_s8, 4  ;;  %s787_s30 = sshll.u32 %s4552_s18, 4  ;;  %s764_s5 = int_to_ptr.vmem [resolvable:$true] %s763_s5  ;;  %s788_s30 = int_to_ptr.vmem [resolvable:$true] %s787_s30 }
  0xbb   : > { %s5613_s12 = sld [smem:[#allocation63_spill]] }
  0xc1   : > { %s4008_s10 = scalar_lea.hbm %s5613_s12, 512 }
  0xc2   : > { %p4009_p13 = scmp.ne.s32.totalorder %s5613_s12, %s4008_s10  ;;  %p4015_p3 = scmp.lt.u32.totalorder %s4008_s10, %s5613_s12 }
  0xc4   : > { %p4011_p0 = pnand %p4009_p13, %p4760_p8 }
  0xc6   : > { %p4012_p1 = pneg %p4011_p0 }
  0xc8   : > { %p4017_p2 = pnand %p4015_p3, %p4012_p1 }
  0xca   : > { %4020 = shalt.err (!%p4017_p2)
}
  0xcb   : > { %s4021_s23 = scalar_lea.vmem %s764_s5, 512  ;;  %p4029_p4 = scmp.lt.s32.totalorder %s764_s5, %s764_s5 }
  0xcc   : > { %p4022_p5 = scmp.ne.s32.totalorder %s764_s5, %s4021_s23  ;;  %p4030_p10 = scmp.lt.s32.totalorder %s4021_s23, %s4021_s23 }
  0xce   : > { %p4024_p7 = pnand %p4022_p5, %p4760_p8  ;;  %p4031_p11 = por %p4030_p10, %p4029_p4 }
  0xd0   : > { %p4025_p9 = pneg %p4024_p7 }
  0xd2   : > { %p4032_p12 = pnand %p4031_p11, %p4025_p9 }
  0xd4   : > { %4035 = shalt.err (!%p4032_p12)
}
  0xd5   : > { %s5614_s26 = smov 8   ;;  %s5615_s8 = smov 128  }
  0xd6   : > { %3687 = dma.hbm_to_vmem [thread:$0]  (!%p4744_p6), %s5613_s12, 512, %s764_s5, [#allocation21], %s5615_s8, %s5615_s8, %s5614_s26  }
  0xd7   : > { %s5616_s14 = sld [smem:[#allocation65_spill]] }
  0xdd   : > { %s4036_s10 = scalar_lea.hbm %s5616_s14, 512 }
  0xde   : > { %p4037_p13 = scmp.ne.s32.totalorder %s5616_s14, %s4036_s10  ;;  %p4043_p3 = scmp.lt.u32.totalorder %s4036_s10, %s5616_s14 }
  0xe0   : > { %p4039_p0 = pnand %p4037_p13, %p4760_p8 }
  0xe2   : > { %p4040_p1 = pneg %p4039_p0 }
  0xe4   : > { %p4045_p2 = pnand %p4043_p3, %p4040_p1 }
  0xe6   : > { %4048 = shalt.err (!%p4045_p2)
}
  0xe7   : > { %s4049_s6 = scalar_lea.vmem %s788_s30, 512  ;;  %p4057_p4 = scmp.lt.s32.totalorder %s788_s30, %s788_s30 }
  0xe8   : > { %p4050_p5 = scmp.ne.s32.totalorder %s788_s30, %s4049_s6  ;;  %p4058_p10 = scmp.lt.s32.totalorder %s4049_s6, %s4049_s6 }
  0xea   : > { %p4052_p7 = pnand %p4050_p5, %p4760_p8  ;;  %p4059_p11 = por %p4058_p10, %p4057_p4 }
  0xec   : > { %p4053_p9 = pneg %p4052_p7 }
  0xee   : > { %p4060_p12 = pnand %p4059_p11, %p4053_p9 }
  0xf0   : > { %4063 = shalt.err (!%p4060_p12)
}
  0xf1   : > { %3693 = dma.hbm_to_vmem [thread:$0]  (!%p4744_p6), %s5616_s14, 512, %s788_s30, [#allocation24], %s5615_s8, %s5615_s8, %s5614_s26  }
  0xf2   : > { %s4553_s27 = smov [#allocation26]   ;;  %s4554_s10 = smov [#allocation29]  }
  0xf3   : > { %s811_s29 = sshll.u32 %s4553_s27, 4  ;;  %s841_s0 = sshll.u32 %s4554_s10, 4  ;;  %s812_s29 = int_to_ptr.vmem [resolvable:$true] %s811_s29  ;;  %s842_s0 = int_to_ptr.vmem [resolvable:$true] %s841_s0 }
  0xf4   : > { %s5617_s16 = sld [smem:[#allocation67_spill]] }
  0xfa   : > { %s4064_s23 = scalar_lea.hbm %s5617_s16, 512 }
  0xfb   : > { %p4065_p13 = scmp.ne.s32.totalorder %s5617_s16, %s4064_s23  ;;  %p4071_p3 = scmp.lt.u32.totalorder %s4064_s23, %s5617_s16 }
  0xfd   : > { %p4067_p0 = pnand %p4065_p13, %p4760_p8 }
  0xff   : > { %p4068_p1 = pneg %p4067_p0 }
 0x101   : > { %p4073_p2 = pnand %p4071_p3, %p4068_p1 }
 0x103   : > { %4076 = shalt.err (!%p4073_p2)
}
 0x104   : > { %s4077_s30 = scalar_lea.vmem %s812_s29, 512  ;;  %p4085_p4 = scmp.lt.s32.totalorder %s812_s29, %s812_s29 }
 0x105   : > { %p4078_p5 = scmp.ne.s32.totalorder %s812_s29, %s4077_s30  ;;  %p4086_p10 = scmp.lt.s32.totalorder %s4077_s30, %s4077_s30 }
 0x107   : > { %p4080_p7 = pnand %p4078_p5, %p4760_p8  ;;  %p4087_p11 = por %p4086_p10, %p4085_p4 }
 0x109   : > { %p4081_p9 = pneg %p4080_p7 }
 0x10b   : > { %p4088_p12 = pnand %p4087_p11, %p4081_p9 }
 0x10d   : > { %4091 = shalt.err (!%p4088_p12)
}
 0x10e   : > { %3699 = dma.hbm_to_vmem [thread:$0]  (!%p4744_p6), %s5617_s16, 512, %s812_s29, [#allocation27], %s5615_s8, %s5615_s8, %s5614_s26  }
 0x10f   : > { %s4092_s10 = scalar_lea.hbm %s5540_s20, 512 }
 0x110   : > { %p4093_p13 = scmp.ne.s32.totalorder %s5540_s20, %s4092_s10  ;;  %p4099_p3 = scmp.lt.u32.totalorder %s4092_s10, %s5540_s20 }
 0x112   : > { %p4095_p0 = pnand %p4093_p13, %p4760_p8 }
 0x114   : > { %p4096_p1 = pneg %p4095_p0 }
 0x116   : > { %p4101_p2 = pnand %p4099_p3, %p4096_p1 }
 0x118   : > { %4104 = shalt.err (!%p4101_p2)
}
 0x119   : > { %s4105_s5 = scalar_lea.vmem %s842_s0, 512  ;;  %p4113_p4 = scmp.lt.s32.totalorder %s842_s0, %s842_s0 }
 0x11a   : > { %p4106_p5 = scmp.ne.s32.totalorder %s842_s0, %s4105_s5  ;;  %p4114_p10 = scmp.lt.s32.totalorder %s4105_s5, %s4105_s5 }
 0x11c   : > { %p4108_p7 = pnand %p4106_p5, %p4760_p8  ;;  %p4115_p11 = por %p4114_p10, %p4113_p4 }
 0x11e   : > { %p4109_p9 = pneg %p4108_p7 }
 0x120   : > { %p4116_p12 = pnand %p4115_p11, %p4109_p9 }
 0x122   : > { %4119 = shalt.err (!%p4116_p12)
}
 0x123   : > { %3705 = dma.hbm_to_vmem [thread:$0]  (!%p4744_p6), %s5540_s20, 512, %s842_s0, [#allocation30], %s5615_s8, %s5615_s8, %s5614_s26  }
 0x124   : > { %s4555_s12 = smov [#allocation10]   ;;  %s4556_s18 = smov [#allocation13]  }
 0x125   : > { %s677_s4 = sshll.u32 %s4555_s12, 4  ;;  %s701_s27 = sshll.u32 %s4556_s18, 4  ;;  %s678_s4 = int_to_ptr.vmem [resolvable:$true] %s677_s4  ;;  %s702_s27 = int_to_ptr.vmem [resolvable:$true] %s701_s27 }
 0x126   : > { %s5618_s21 = sld [smem:[#allocation55_spill]] }
 0x12c   : > { %s4120_s23 = scalar_lea.hbm %s5618_s21, 512 }
 0x12d   : > { %p4121_p13 = scmp.ne.s32.totalorder %s5618_s21, %s4120_s23  ;;  %p4127_p3 = scmp.lt.u32.totalorder %s4120_s23, %s5618_s21 }
 0x12f   : > { %p4123_p0 = pnand %p4121_p13, %p4760_p8 }
 0x131   : > { %p4124_p1 = pneg %p4123_p0 }
 0x133   : > { %p4129_p2 = pnand %p4127_p3, %p4124_p1 }
 0x135   : > { %4132 = shalt.err (!%p4129_p2)
}
 0x136   : > { %s4133_s0 = scalar_lea.vmem %s678_s4, 512  ;;  %p4141_p4 = scmp.lt.s32.totalorder %s678_s4, %s678_s4 }
 0x137   : > { %p4134_p5 = scmp.ne.s32.totalorder %s678_s4, %s4133_s0  ;;  %p4142_p10 = scmp.lt.s32.totalorder %s4133_s0, %s4133_s0 }
 0x139   : > { %p4136_p7 = pnand %p4134_p5, %p4760_p8  ;;  %p4143_p11 = por %p4142_p10, %p4141_p4 }
 0x13b   : > { %p4137_p9 = pneg %p4136_p7 }
 0x13d   : > { %p4144_p12 = pnand %p4143_p11, %p4137_p9 }
 0x13f   : > { %4147 = shalt.err (!%p4144_p12)
}
 0x140   : > { %3666 = dma.hbm_to_vmem [thread:$0]  (!%p4744_p6), %s5618_s21, 512, %s678_s4, [#allocation9], %s5615_s8, %s5615_s8, %s5614_s26  }
 0x141   : > { %s5619_s10 = sld [smem:[#allocation57_spill]] }
 0x147   : > { %s4148_s1 = scalar_lea.hbm %s5619_s10, 512 }
 0x148   : > { %p4149_p13 = scmp.ne.s32.totalorder %s5619_s10, %s4148_s1  ;;  %p4155_p3 = scmp.lt.u32.totalorder %s4148_s1, %s5619_s10 }
 0x14a   : > { %p4151_p0 = pnand %p4149_p13, %p4760_p8 }
 0x14c   : > { %p4152_p1 = pneg %p4151_p0 }
 0x14e   : > { %p4157_p2 = pnand %p4155_p3, %p4152_p1 }
 0x150   : > { %4160 = shalt.err (!%p4157_p2)
}
 0x151   : > { %s4161_s0 = scalar_lea.vmem %s702_s27, 512  ;;  %p4169_p4 = scmp.lt.s32.totalorder %s702_s27, %s702_s27 }
 0x152   : > { %p4162_p5 = scmp.ne.s32.totalorder %s702_s27, %s4161_s0  ;;  %p4170_p10 = scmp.lt.s32.totalorder %s4161_s0, %s4161_s0 }
 0x154   : > { %p4164_p7 = pnand %p4162_p5, %p4760_p8  ;;  %p4171_p11 = por %p4170_p10, %p4169_p4 }
 0x156   : > { %p4165_p9 = pneg %p4164_p7 }
 0x158   : > { %p4172_p12 = pnand %p4171_p11, %p4165_p9 }
 0x15a   : > { %4175 = shalt.err (!%p4172_p12)
}
 0x15b   : > { %3672 = dma.hbm_to_vmem [thread:$0]  (!%p4744_p6), %s5619_s10, 512, %s702_s27, [#allocation12], %s5615_s8, %s5615_s8, %s5614_s26  }
 0x15c   : > { %s4557_s30 = smov [#allocation16]   ;;  %s4558_s18 = smov [#allocation19]  }
 0x15d   : > { %s725_s12 = sshll.u32 %s4557_s30, 4  ;;  %s753_s1 = sshll.u32 %s4558_s18, 4  ;;  %s726_s12 = int_to_ptr.vmem [resolvable:$true] %s725_s12  ;;  %s754_s1 = int_to_ptr.vmem [resolvable:$true] %s753_s1 }
 0x15e   : > { %s5620_s5 = sld [smem:[#allocation59_spill]] }
 0x164   : > { %s4176_s29 = scalar_lea.hbm %s5620_s5, 512 }
 0x165   : > { %p4177_p13 = scmp.ne.s32.totalorder %s5620_s5, %s4176_s29  ;;  %p4183_p3 = scmp.lt.u32.totalorder %s4176_s29, %s5620_s5 }
 0x167   : > { %p4179_p0 = pnand %p4177_p13, %p4760_p8 }
 0x169   : > { %p4180_p1 = pneg %p4179_p0 }
 0x16b   : > { %p4185_p2 = pnand %p4183_p3, %p4180_p1 }
 0x16d   : > { %4188 = shalt.err (!%p4185_p2)
}
 0x16e   : > { %s4189_s27 = scalar_lea.vmem %s726_s12, 512  ;;  %p4197_p4 = scmp.lt.s32.totalorder %s726_s12, %s726_s12 }
 0x16f   : > { %p4190_p5 = scmp.ne.s32.totalorder %s726_s12, %s4189_s27  ;;  %p4198_p10 = scmp.lt.s32.totalorder %s4189_s27, %s4189_s27 }
 0x171   : > { %p4192_p7 = pnand %p4190_p5, %p4760_p8  ;;  %p4199_p11 = por %p4198_p10, %p4197_p4 }
 0x173   : > { %p4193_p9 = pneg %p4192_p7 }
 0x175   : > { %p4200_p12 = pnand %p4199_p11, %p4193_p9 }
 0x177   : > { %4203 = shalt.err (!%p4200_p12)
}
 0x178   : > { %3678 = dma.hbm_to_vmem [thread:$0]  (!%p4744_p6), %s5620_s5, 512, %s726_s12, [#allocation15], %s5615_s8, %s5615_s8, %s5614_s26  }
 0x179   : > { %s5621_s11 = sld [smem:[#allocation62_spill]] }
 0x17f   : > { %s4204_s18 = scalar_lea.hbm %s5621_s11, 16 }
 0x180   : > { %p4205_p13 = scmp.ne.s32.totalorder %s5621_s11, %s4204_s18  ;;  %p4211_p3 = scmp.lt.u32.totalorder %s4204_s18, %s5621_s11 }
 0x182   : > { %p4207_p0 = pnand %p4205_p13, %p4760_p8 }
 0x184   : > { %p4208_p1 = pneg %p4207_p0 }
 0x186   : > { %p4213_p2 = pnand %p4211_p3, %p4208_p1 }
 0x188   : > { %4216 = shalt.err (!%p4213_p2)
}
 0x189   : > { %s4217_s4 = scalar_lea.vmem %s754_s1, 16  ;;  %s4224_s12 = scalar_lea.vmem %s754_s1, 32 }
 0x18a   : > { %p4218_p5 = scmp.ne.s32.totalorder %s754_s1, %s4217_s4  ;;  %p4225_p4 = scmp.lt.s32.totalorder %s754_s1, %s754_s1 }
 0x18b   : > { %p4226_p10 = scmp.lt.s32.totalorder %s4224_s12, %s4217_s4 }
 0x18c   : > { %p4220_p7 = pnand %p4218_p5, %p4760_p8 }
 0x18d   : > { %p4227_p11 = por %p4226_p10, %p4225_p4 }
 0x18e   : > { %p4221_p9 = pneg %p4220_p7 }
 0x190   : > { %p4228_p12 = pnand %p4227_p11, %p4221_p9 }
 0x192   : > { %4231 = shalt.err (!%p4228_p12)
}
 0x193   : > { %3684 = dma.hbm_to_vmem [thread:$0]  (!%p4744_p6), %s5621_s11, 16, %s754_s1, [#allocation18]  }
 0x194   : > { %s4559_s19 = smov [#allocation22]   ;;  %s4560_s30 = smov [#allocation25]  }
 0x195   : > { %s777_s14 = sshll.u32 %s4559_s19, 4  ;;  %s801_s18 = sshll.u32 %s4560_s30, 4  ;;  %s778_s14 = int_to_ptr.vmem [resolvable:$true] %s777_s14  ;;  %s802_s18 = int_to_ptr.vmem [resolvable:$true] %s801_s18 }
 0x196   : > { %s5622_s13 = sld [smem:[#allocation64_spill]] }
 0x19c   : > { %s4232_s29 = scalar_lea.hbm %s5622_s13, 16 }
 0x19d   : > { %p4233_p13 = scmp.ne.s32.totalorder %s5622_s13, %s4232_s29  ;;  %p4239_p3 = scmp.lt.u32.totalorder %s4232_s29, %s5622_s13 }
 0x19f   : > { %p4235_p0 = pnand %p4233_p13, %p4760_p8 }
 0x1a1   : > { %p4236_p1 = pneg %p4235_p0 }
 0x1a3   : > { %p4241_p2 = pnand %p4239_p3, %p4236_p1 }
 0x1a5   : > { %4244 = shalt.err (!%p4241_p2)
}
 0x1a6   : > { %s4245_s1 = scalar_lea.vmem %s778_s14, 16  ;;  %s4252_s16 = scalar_lea.vmem %s778_s14, 32 }
 0x1a7   : > { %p4246_p5 = scmp.ne.s32.totalorder %s778_s14, %s4245_s1  ;;  %p4253_p4 = scmp.lt.s32.totalorder %s778_s14, %s778_s14 }
 0x1a8   : > { %p4254_p10 = scmp.lt.s32.totalorder %s4252_s16, %s4245_s1 }
 0x1a9   : > { %p4248_p7 = pnand %p4246_p5, %p4760_p8 }
 0x1aa   : > { %p4255_p11 = por %p4254_p10, %p4253_p4 }
 0x1ab   : > { %p4249_p9 = pneg %p4248_p7 }
 0x1ad   : > { %p4256_p12 = pnand %p4255_p11, %p4249_p9 }
 0x1af   : > { %4259 = shalt.err (!%p4256_p12)
}
 0x1b0   : > { %3690 = dma.hbm_to_vmem [thread:$0]  (!%p4744_p6), %s5622_s13, 16, %s778_s14, [#allocation21]  }
 0x1b1   : > { %s5623_s15 = sld [smem:[#allocation66_spill]] }
 0x1b7   : > { %s4260_s29 = scalar_lea.hbm %s5623_s15, 16 }
 0x1b8   : > { %p4261_p13 = scmp.ne.s32.totalorder %s5623_s15, %s4260_s29  ;;  %p4267_p3 = scmp.lt.u32.totalorder %s4260_s29, %s5623_s15 }
 0x1ba   : > { %p4263_p0 = pnand %p4261_p13, %p4760_p8 }
 0x1bc   : > { %p4264_p1 = pneg %p4263_p0 }
 0x1be   : > { %p4269_p2 = pnand %p4267_p3, %p4264_p1 }
 0x1c0   : > { %4272 = shalt.err (!%p4269_p2)
}
 0x1c1   : > { %s4273_s1 = scalar_lea.vmem %s802_s18, 16  ;;  %s4280_s14 = scalar_lea.vmem %s802_s18, 32 }
 0x1c2   : > { %p4274_p5 = scmp.ne.s32.totalorder %s802_s18, %s4273_s1  ;;  %p4281_p4 = scmp.lt.s32.totalorder %s802_s18, %s802_s18 }
 0x1c3   : > { %p4282_p10 = scmp.lt.s32.totalorder %s4280_s14, %s4273_s1 }
 0x1c4   : > { %p4276_p7 = pnand %p4274_p5, %p4760_p8 }
 0x1c5   : > { %p4283_p11 = por %p4282_p10, %p4281_p4 }
 0x1c6   : > { %p4277_p9 = pneg %p4276_p7 }
 0x1c8   : > { %p4284_p12 = pnand %p4283_p11, %p4277_p9 }
 0x1ca   : > { %4287 = shalt.err (!%p4284_p12)
}
 0x1cb   : > { %3696 = dma.hbm_to_vmem [thread:$0]  (!%p4744_p6), %s5623_s15, 16, %s802_s18, [#allocation24]  }
 0x1cc   : > { %s4561_s30 = smov [#allocation28]   ;;  %s4562_s6 = smov [#allocation31]  }
 0x1cd   : > { %s825_s23 = sshll.u32 %s4561_s30, 4  ;;  %s857_s29 = sshll.u32 %s4562_s6, 4  ;;  %s826_s23 = int_to_ptr.vmem [resolvable:$true] %s825_s23  ;;  %s858_s29 = int_to_ptr.vmem [resolvable:$true] %s857_s29 }
 0x1ce   : > { %s5624_s17 = sld [smem:[#allocation68_spill]] }
 0x1d4   : > { %s4288_s12 = scalar_lea.hbm %s5624_s17, 16 }
 0x1d5   : > { %p4289_p13 = scmp.ne.s32.totalorder %s5624_s17, %s4288_s12  ;;  %p4295_p3 = scmp.lt.u32.totalorder %s4288_s12, %s5624_s17 }
 0x1d7   : > { %p4291_p0 = pnand %p4289_p13, %p4760_p8 }
 0x1d9   : > { %p4292_p1 = pneg %p4291_p0 }
 0x1db   : > { %p4297_p2 = pnand %p4295_p3, %p4292_p1 }
 0x1dd   : > { %4300 = shalt.err (!%p4297_p2)
}
 0x1de   : > { %s4301_s18 = scalar_lea.vmem %s826_s23, 16  ;;  %s4308_s19 = scalar_lea.vmem %s826_s23, 32 }
 0x1df   : > { %p4302_p5 = scmp.ne.s32.totalorder %s826_s23, %s4301_s18  ;;  %p4309_p4 = scmp.lt.s32.totalorder %s826_s23, %s826_s23 }
 0x1e0   : > { %p4310_p10 = scmp.lt.s32.totalorder %s4308_s19, %s4301_s18 }
 0x1e1   : > { %p4304_p7 = pnand %p4302_p5, %p4760_p8 }
 0x1e2   : > { %p4311_p11 = por %p4310_p10, %p4309_p4 }
 0x1e3   : > { %p4305_p9 = pneg %p4304_p7 }
 0x1e5   : > { %p4312_p12 = pnand %p4311_p11, %p4305_p9 }
 0x1e7   : > { %4315 = shalt.err (!%p4312_p12)
}
 0x1e8   : > { %3702 = dma.hbm_to_vmem [thread:$0]  (!%p4744_p6), %s5624_s17, 16, %s826_s23, [#allocation27]  }
 0x1e9   : > { %s4316_s12 = scalar_lea.hbm %s5542_s22, 512 }
 0x1ea   : > { %p4317_p13 = scmp.ne.s32.totalorder %s5542_s22, %s4316_s12  ;;  %p4323_p3 = scmp.lt.u32.totalorder %s4316_s12, %s5542_s22 }
 0x1ec   : > { %p4319_p0 = pnand %p4317_p13, %p4760_p8 }
 0x1ee   : > { %p4320_p1 = pneg %p4319_p0 }
 0x1f0   : > { %p4325_p2 = pnand %p4323_p3, %p4320_p1 }
 0x1f2   : > { %4328 = shalt.err (!%p4325_p2)
}
 0x1f3   : > { %s4329_s18 = scalar_lea.vmem %s858_s29, 512  ;;  %p4337_p4 = scmp.lt.s32.totalorder %s858_s29, %s858_s29 }
 0x1f4   : > { %p4330_p5 = scmp.ne.s32.totalorder %s858_s29, %s4329_s18  ;;  %p4338_p10 = scmp.lt.s32.totalorder %s4329_s18, %s4329_s18 }
 0x1f6   : > { %p4332_p7 = pnand %p4330_p5, %p4760_p8  ;;  %p4339_p11 = por %p4338_p10, %p4337_p4 }
 0x1f8   : > { %p4333_p9 = pneg %p4332_p7 }
 0x1fa   : > { %p4340_p12 = pnand %p4339_p11, %p4333_p9 }
 0x1fc   : > { %4343 = shalt.err (!%p4340_p12)
}
 0x1fd   : > { %3708 = dma.hbm_to_vmem [thread:$0]  (!%p4744_p6), %s5542_s22, 512, %s858_s29, [#allocation30], %s5615_s8, %s5615_s8, %s5614_s26  }
 0x1fe   : > { %s4563_s30 = smov [#allocation32]   ;;  %s4344_s12 = scalar_lea.hbm %s5544_s24, 512 }
 0x1ff   : > { %s873_s6 = sshll.u32 %s4563_s30, 4  ;;  %p4345_p13 = scmp.ne.s32.totalorder %s5544_s24, %s4344_s12  ;;  %s874_s6 = int_to_ptr.vmem [resolvable:$true] %s873_s6 }
 0x200   : > { %p4351_p3 = scmp.lt.u32.totalorder %s4344_s12, %s5544_s24 }
 0x201   : > { %p4347_p0 = pnand %p4345_p13, %p4760_p8 }
 0x203   : > { %p4348_p1 = pneg %p4347_p0 }
 0x205   : > { %p4353_p2 = pnand %p4351_p3, %p4348_p1 }
 0x207   : > { %4356 = shalt.err (!%p4353_p2)
}
 0x208   : > { %s4357_s29 = scalar_lea.vmem %s874_s6, 512  ;;  %p4365_p4 = scmp.lt.s32.totalorder %s874_s6, %s874_s6 }
 0x209   : > { %p4358_p5 = scmp.ne.s32.totalorder %s874_s6, %s4357_s29  ;;  %p4366_p10 = scmp.lt.s32.totalorder %s4357_s29, %s4357_s29 }
 0x20b   : > { %p4360_p7 = pnand %p4358_p5, %p4760_p8  ;;  %p4367_p11 = por %p4366_p10, %p4365_p4 }
 0x20d   : > { %p4361_p9 = pneg %p4360_p7 }
 0x20f   : > { %p4368_p12 = pnand %p4367_p11, %p4361_p9 }
 0x211   : > { %4371 = shalt.err (!%p4368_p12)
}
 0x212   : > { %s5625_s9 = sld [smem:[#allocation48_spill]]  ;;  %s5626_s19 = sld [smem:[#allocation49_spill]] }
 0x213   : > { %3711 = dma.hbm_to_vmem [thread:$0]  (!%p4744_p6), %s5544_s24, 512, %s874_s6, [#allocation33], %s5615_s8, %s5615_s8, %s5614_s26  }
 0x214   : > { %s3134_s2 = sadd.s32 4294967294, %s4542_s28   ;;  %s5131_s30 = sadd.s32 1, %s4542_s28  }
 0x215   : > { %s58_s0 = ssub.s32 %s4542_s28, %s5131_s30  ;;  %s61_s4 = sadd.s32 1, %s4538_s7 }
 0x216   : > { %p59_p8 = scmp.eq.s32.totalorder %s58_s0, 0  ;;  %p68_p13 = scmp.ne.s32.totalorder %s4538_s7, %s4534_s3 }
 0x217   : > { %p69_p0 = scmp.eq.s32.totalorder %s4542_s28, 0  ;;  %p634_p7 = scmp.eq.s32.totalorder %s3134_s2, 1 }
 0x218   : > { %p74_p1 = scmp.ne.s32.totalorder %s4534_s3, %s5625_s9  ;;  %p5628_p2 = scmp.eq.s32.totalorder %s5626_s19, 0 }
 0x219   : > { %s5142_s12 = scalar_select %p59_p8, %s4538_s7, %s61_s4  }
 0x21a   : > { %p5144_p3 = por %p69_p0, %p68_p13  ;;  %p5150_p6 = por %p5628_p2, %p74_p1 }
 0x21b   : > { %p628_p5 = scmp.eq.s32.totalorder %s5626_s19, 1  ;;  %p3741_p9 = scmp.lt.s32.totalorder %s4542_s28, 2 }
 0x21c   : > { %s5157_s1 = sand.u32 1, %s4538_s7   ;;  %p5163_p10 = por %p634_p7, %p74_p1 }
 0x21d   : > { %p5159_p4 = por %p628_p5, %p68_p13  ;;  %s3155_s29 = sshll.u32 %s5157_s1, 3 }
 0x21e   : > { %s5631_s16 = scalar_select %p5163_p10, 1, 0 }
 0x21f   : > { %s5630_s14 = scalar_select %p5159_p4, 1, 0 }
 0x220   : > { %s3156_s18 = sshll.u32 %s4542_s28, 7  ;;  %s5632_s19 = sld [smem:[#allocation51_spill]] }
 0x221   : > { %s894_s0 = scalar_lea.vmem [#allocation2], %s3155_s29  ;;  %p5178_p11 = pnand %p3741_p9, %p5144_p3 }
 0x222   : > { %s901_s4 = sshll.u32 %s894_s0, 4  ;;  %s3157_s10 = sshll.u32 %s5157_s1, 4  ;;  %s5174_s4 = int_to_ptr.vmem [resolvable:$true] %s901_s4 }
 0x223   : > { %s891_s23 = scalar_lea.sflag [#allocation3], %s5157_s1  ;;  %p4374_p8 = pneg %p5178_p11 }
 0x226   : > { %s5172_s2 = scalar_lea.hbm %s5632_s19, %s3156_s18  ;;  %s4377_s27 = scalar_lea.hbm %s5632_s19, 256 }
 0x227   : > { %s4372_s18 = scalar_lea.hbm %s5172_s2, 128  ;;  %p4378_p1 = scmp.lt.u32.totalorder %s5172_s2, %s5632_s19 }
 0x228   : > { %p4373_p12 = scmp.ne.s32.totalorder %s5172_s2, %s4372_s18  ;;  %p4379_p3 = scmp.lt.u32.totalorder %s4377_s27, %s4372_s18 }
 0x229   : > { %p4381_p5 = scmp.lt.u32.totalorder %s4372_s18, %s5172_s2 }
 0x22a   : > { %p4375_p13 = pnand %p4374_p8, %p4373_p12  ;;  %p4380_p2 = por %p4379_p3, %p4378_p1 }
 0x22c   : > { %p4376_p0 = pneg %p4375_p13  ;;  %p4382_p7 = por %p4381_p5, %p4380_p2 }
 0x22e   : > { %p4383_p9 = pnand %p4382_p7, %p4376_p0 }
 0x230   : > { %4386 = shalt.err (!%p4383_p9)
}
 0x231   : > { %s4387_s11 = scalar_lea.vmem %s5174_s4, 128  ;;  %s4564_s29 = smov [#allocation2]  }
 0x232   : > { %p4388_p12 = scmp.ne.s32.totalorder %s5174_s4, %s4387_s11  ;;  %s4392_s9 = sshll.u32 %s4564_s29, 4  ;;  %s4393_s9 = int_to_ptr.vmem [resolvable:$false] %s4392_s9 }
 0x233   : > { %s4394_s13 = scalar_lea.vmem %s4393_s9, 256  ;;  %p4395_p4 = scmp.lt.s32.totalorder %s5174_s4, %s4393_s9 }
 0x234   : > { %p4390_p13 = pnand %p4388_p12, %p4374_p8  ;;  %p4396_p1 = scmp.lt.s32.totalorder %s4394_s13, %s4387_s11 }
 0x236   : > { %p4391_p10 = pneg %p4390_p13  ;;  %p4397_p3 = por %p4396_p1, %p4395_p4 }
 0x238   : > { %p4398_p2 = pnand %p4397_p3, %p4391_p10 }
 0x23a   : > { %4401 = shalt.err (!%p4398_p2)
}
 0x23b   : > { %3715 = dma.hbm_to_vmem [thread:$0]  (!%p5178_p11), %s5172_s2, 128, %s5174_s4, %s891_s23  }
 0x23c   : > { %s912_s18 = scalar_lea.vmem [#allocation5], %s3157_s10  ;;  %s3226_s0 = sshll.u32 %s4542_s28, 8 }
 0x23d   : > { %s919_s27 = sshll.u32 %s912_s18, 4  ;;  %s5634_s9 = sld [smem:[#allocation52_spill]]  ;;  %s5212_s27 = int_to_ptr.vmem [resolvable:$true] %s919_s27 }
 0x23e   : > { %s5635_s15 = sand.u32 1, %s4542_s28  }
 0x23f   : > { %s5222_s17 = scalar_lea.sflag [#allocation6], %s5635_s15 }
 0x243   : > { %s5218_s13 = scalar_lea.hbm %s5634_s9, %s3226_s0  ;;  %s4407_s2 = scalar_lea.hbm %s5634_s9, 512 }
 0x244   : > { %s4402_s19 = scalar_lea.hbm %s5218_s13, 256  ;;  %p4408_p5 = scmp.lt.u32.totalorder %s5218_s13, %s5634_s9 }
 0x245   : > { %p4403_p4 = scmp.ne.s32.totalorder %s5218_s13, %s4402_s19  ;;  %p4409_p7 = scmp.lt.u32.totalorder %s4407_s2, %s4402_s19 }
 0x246   : > { %p4411_p12 = scmp.lt.u32.totalorder %s4402_s19, %s5218_s13 }
 0x247   : > { %p4405_p10 = pnand %p4403_p4, %p4374_p8  ;;  %p4410_p9 = por %p4409_p7, %p4408_p5 }
 0x249   : > { %p4406_p0 = pneg %p4405_p10  ;;  %p4412_p13 = por %p4411_p12, %p4410_p9 }
 0x24b   : > { %p4413_p1 = pnand %p4412_p13, %p4406_p0 }
 0x24d   : > { %4416 = shalt.err (!%p4413_p1)
}
 0x24e   : > { %s4417_s15 = scalar_lea.vmem %s5212_s27, 256  ;;  %s4565_s18 = smov [#allocation5]  }
 0x24f   : > { %p4418_p3 = scmp.ne.s32.totalorder %s5212_s27, %s4417_s15  ;;  %s4422_s0 = sshll.u32 %s4565_s18, 4  ;;  %s4423_s0 = int_to_ptr.vmem [resolvable:$false] %s4422_s0 }
 0x250   : > { %s4424_s29 = scalar_lea.vmem %s4423_s0, 512  ;;  %p4425_p10 = scmp.lt.s32.totalorder %s5212_s27, %s4423_s0 }
 0x251   : > { %p4420_p2 = pnand %p4418_p3, %p4374_p8  ;;  %p4426_p5 = scmp.lt.s32.totalorder %s4424_s29, %s4417_s15 }
 0x253   : > { %p4421_p4 = pneg %p4420_p2  ;;  %p4427_p7 = por %p4426_p5, %p4425_p10 }
 0x255   : > { %p4428_p9 = pnand %p4427_p7, %p4421_p4 }
 0x257   : > { %4431 = shalt.err (!%p4428_p9)
}
 0x258   : > { %3718 = dma.hbm_to_vmem [thread:$0]  (!%p5178_p11), %s5218_s13, 256, %s5212_s27, %s5222_s17, %s5615_s8, %s5615_s8, %s5614_s26  }
 0x259   : > { %s5636_s19 = sld [smem:[#allocation50_spill]] }
 0x25f   : > { %p5637_p8 = scmp.ne.s32.totalorder %s5636_s19, 0 }
 0x260   : > { %s5254_s11 = sand.u32 (!%p5637_p8), 1, %s4534_s3  }
 0x261   : > { %931 = sbr.rel (%p5637_p8) target bundleno = 4964 (0x1364), region = 124  ;;  %s3161_s10 = sshll.u32 (!%p5637_p8), %s5254_s11, 3 }
 0x262   : > { %s934_s1 = scalar_lea.sflag (!%p5637_p8), [#allocation3], %s5254_s11  ;;  %s5260_s5 = scalar_lea.vmem (!%p5637_p8), [#allocation2], %s3161_s10 }
 0x268   : > { %4477 = dma.done.wait (%p5150_p6), %s934_s1, 128  }
 0x269   : > { %4479 = vsyncadd (%p5150_p6), %s934_s1, 4294967168  ;;  %s5638_s17 = sld [smem:[#allocation49_spill]]  ;;  %s3162_s8 = sshll.u32 %s5254_s11, 4 }
 0x26a   : > { %s5268_s13 = scalar_lea.vmem [#allocation5], %s3162_s8 }
 0x26f   : > { %s942_s26 = sand.u32 1, %s5638_s17  }
 0x270   : > { %s943_s27 = scalar_lea.sflag [#allocation6], %s942_s26 }
 0x271   : > { %4481 = dma.done.wait (%p5150_p6), %s943_s27, 256  }
 0x272   : > { %4483 = vsyncadd (%p5150_p6), %s943_s27, 4294967040  ;;  %p5639_p11 = scmp.eq.s32.totalorder %s5638_s17, 0 }
 0x274   : > { %4485 = dma.done.wait (%p5639_p11), [#allocation6], 512   ;;  %p5640_p0 = pmov %p5639_p11 }
 0x276   : > { %4487 = vsyncadd (%p5640_p0), [#allocation6], 4294966784  ;;  %p5641_p12 = pmov %p5640_p0 }
 0x277   : > { %p5642_p13 = pmov %p5640_p0 }
 0x278   : > { %4489 = dma.done.wait (%p5641_p12), [#allocation9], 528  }
 0x279   : > { %4491 = vsyncadd (%p5642_p13), [#allocation9], 4294966768  ;;  %p5643_p1 = pmov %p5640_p0 }
 0x27a   : > { %p5644_p3 = pmov %p5640_p0 }
 0x27b   : > { %4493 = dma.done.wait (%p5643_p1), [#allocation12], 528  }
 0x27c   : > { %4495 = vsyncadd (%p5644_p3), [#allocation12], 4294966768  ;;  %p5645_p6 = pmov %p5640_p0 }
 0x27d   : > { %p5646_p2 = pmov %p5640_p0 }
 0x27e   : > { %4497 = dma.done.wait (%p5645_p6), [#allocation15], 528  }
 0x27f   : > { %4499 = vsyncadd (%p5646_p2), [#allocation15], 4294966768  ;;  %p5647_p4 = pmov %p5640_p0 }
 0x280   : > { %p5648_p10 = pmov %p5640_p0 }
 0x281   : > { %4501 = dma.done.wait (%p5647_p4), [#allocation18], 32  }
 0x282   : > { %4503 = vsyncadd (%p5648_p10), [#allocation18], 4294967264  ;;  %p5649_p5 = pmov %p5640_p0 }
 0x283   : > { %p5650_p7 = pmov %p5640_p0 }
 0x284   : > { %4505 = dma.done.wait (%p5649_p5), [#allocation21], 528  }
 0x285   : > { %4507 = vsyncadd (%p5650_p7), [#allocation21], 4294966768  ;;  %p5651_p9 = pmov %p5640_p0 }
 0x286   : > { %p5652_p8 = pmov %p5640_p0 }
 0x287   : > { %4509 = dma.done.wait (%p5651_p9), [#allocation24], 528  }
 0x288   : > { %4511 = vsyncadd (%p5652_p8), [#allocation24], 4294966768  ;;  %p5653_p11 = pmov %p5640_p0 }
 0x28a   : > { %4513 = dma.done.wait (%p5653_p11), [#allocation27], 528  }
 0x28b   : > { %4515 = vsyncadd (%p5640_p0), [#allocation27], 4294966768  ;;  %p5654_p12 = pmov %p5640_p0 }
 0x28c   : > { %p5655_p13 = pmov %p5640_p0 }
 0x28d   : > { %4517 = dma.done.wait (%p5654_p12), [#allocation30], 1024  }
 0x28e   : > { %4519 = vsyncadd (%p5655_p13), [#allocation30], 4294966272  ;;  %p5656_p1 = pmov %p5640_p0 }
 0x28f   : > { %p5657_p3 = pmov %p5640_p0 }
 0x290   : > { %4521 = dma.done.wait (%p5656_p1), [#allocation33], 512  }
 0x291   : > { %4523 = vsyncadd (%p5657_p3), [#allocation33], 4294966784  ;;  %v4566_v0 = vmov 0.0|0.0   ;;  %vm4567_vm0 = vmmov 0   ;;  %v4568_v1 = vmov 0.0   ;;  %vm1106_vm1 = vcmask 261120  }
 0x292   : > { %3489 = vmatprep.subr.bf16.mxu0 %v4566_v0  ;;  %3317 = vmatprep.mubr.msk.f32.mxu0 %vm4567_vm0, %v4568_v1  ;;  %v1180_v2 = vld [vmem:[#allocation10] sm:$0xff]  ;;  %v1181_v3 = vld [vmem:[#allocation10 + $0x8] sm:$0xff]  ;;  %v1182_v4 = vld [vmem:[#allocation10 + $0x10] sm:$0xff]  ;;  %vm1358_vm2 = vcmask 130048   ;;  %s4569_s6 = smov 112   ;;  %s5660_s23 = sld [smem:[#allocation61_spill]] }
 0x293   : > { %v3495_v5 = vpack.c.bf16 %v1181_v3, %v1180_v2  ;;  %v1183_v6 = vld [vmem:[#allocation10 + $0x18] sm:$0xff]  ;;  %v1096_v10 = vld [vmem:[#allocation7 + $0x8] sm:$0xff]  ;;  %v1097_v11 = vld [vmem:[#allocation7 + $0x10] sm:$0xff]  ;;  %s4570_s0 = smov 16   ;;  %s5661_s27 = sld [smem:[#allocation69_spill]]  ;;  %vm2312_vm6 = vcmask 64512  }
 0x294   : > { %v1093_v7 = vld [vmem:[%s5268_s13] sm:$0xff]  ;;  %v3499_v8 = vpack.c.bf16 %v1183_v6, %v1182_v4  ;;  %v1098_v13 = vld [vmem:[#allocation7 + $0x18] sm:$0xff]  ;;  %vm5330_vm3 = vmpackc.low %vm1358_vm2, %vm1358_vm2  ;;  %s5663_s26 = sld [smem:[#allocation70_spill]]  ;;  %s5665_s4 = sld [smem:[#allocation72_spill]] }
 0x295   : > { %3328 = vmatprep.mubr.msk.f32.mxu1 %vm1106_vm1, %v1093_v7  ;;  %v1095_v9 = vld [vmem:[#allocation7] sm:$0xff]  ;;  %3496 = vmatprep.subr.bf16.mxu1 %v3495_v5  ;;  %v3493_v14 = vpack.c.bf16 %v1098_v13, %v1097_v11  ;;  %v1094_v15 = vld [vmem:[%s5268_s13 + $0x8] sm:$0xff]  ;;  %s5666_s29 = sld [smem:[#allocation73_spill]]  ;;  %s3223_s19 = sshll.u32 %s5638_s17, 7 }
 0x296   : > { %v3490_v12 = vpack.c.bf16 %v1096_v10, %v1095_v9  ;;  %3498 = vmatpush3.bf16.msra.mxu1 %v3495_v5  ;;  %v1092_v16 = vld [vmem:[%s5260_s5] sm:$0xff]  ;;  %v3184_v17 = vld [vmem:[#allocation11] ss:$0 sm:$0xff]  ;;  %v3182_v25 = vld [vmem:[#allocation8] ss:$0 sm:$0xff]  ;;  %s1091_s1 = scalar_lea.vmem [#allocation34], %s3161_s10 }
 0x297   : > { %3500 = vmatprep.subr.bf16.mxu1 %v3499_v8  ;;  %v1272_v29 = vld [vmem:[#allocation13] sm:$0xff]  ;;  %v1273_v30 = vld [vmem:[#allocation13 + $0x8] sm:$0xff]  ;;  %v1274_v31 = vld [vmem:[#allocation13 + $0x10] sm:$0xff]  ;;  %s2870_s5 = sshll.u32 %s1091_s1, 4  ;;  %s5667_s8 = sld [smem:[#allocation74_spill]]  ;;  %s5477_s5 = int_to_ptr.vmem [resolvable:$true] %s2870_s5 }
 0x298   : > { %3491 = vmatpush3.bf16.msra.mxu0 %v3490_v12  ;;  %v3503_v32 = vpack.c.bf16 %v1273_v30, %v1272_v29  ;;  %v1275_v33 = vld [vmem:[#allocation13 + $0x18] sm:$0xff]  ;;  %v3187_v39 = vld [vmem:[#allocation14] ss:$0 sm:$0xff]  ;;  %v1790_v29 = vld [vmem:[%s5660_s23 + $0x18] sm:$0xff]  ;;  %s4432_s2 = scalar_lea.vmem %s5477_s5, 128  ;;  %p5668_p2 = scmp.ne.s32.totalorder %s5630_s14, 0 }
 0x299   : > { %3492 = vmatprep.subr.bf16.mxu0 %v4566_v0  ;;  %v3507_v34 = vpack.c.bf16 %v1275_v33, %v1274_v31  ;;  %v3198_v31 = vld [vmem:[#allocation17] ss:$0 sm:$0xff]  ;;  %s5662_s13 = smov %s5661_s27  ;;  %p4433_p6 = scmp.ne.s32.totalorder %s5477_s5, %s4432_s2 }
 0x29a   : > { %3502 = vmatpush3.bf16.msra.mxu1 %v3499_v8  ;;  %s4571_s10 = smov [#allocation34]  }
 0x29b   : > { %3511 = vmatprep.subr.bf16.mxu1 %v4566_v0  ;;  %p4434_p4 = pnand %p4433_p6, %p5668_p2  ;;  %s4436_s17 = sshll.u32 %s4571_s10, 4  ;;  %s4437_s17 = int_to_ptr.vmem [resolvable:$false] %s4436_s17 }
 0x29c   : > { %3494 = vmatpush3.bf16.msra.mxu0 %v3493_v14  ;;  %p4439_p5 = scmp.lt.s32.totalorder %s5477_s5, %s4437_s17 }
 0x29d   : > { %3329 = vmatmul.mubr.msk.f32.vlgmr.msra.gmra.mrb[0].mxu1 %vm1106_vm1, %v1094_v15  ;;  %3504 = vmatprep.subr.bf16.mxu0 %v3503_v32  ;;  %p4435_p10 = pneg %p4434_p4 }
 0x29e   : > { %3346 = vmatprep.mubr.msk.f32.mxu1 %vm4567_vm0, %v4568_v1 }
 0x29f   : > { %3318 = vmatmul.mubr.msk.f32.vlgmr.msra.gmra.mrb[0].mxu0 %vm1106_vm1, %v1092_v16  ;;  %v1704_v16 = vld [vmem:[#allocation16 + $0x8] sm:$0xff] }
 0x2a0   : > { %3339 = vmatprep.mubr.msk.f32.mxu0 %vm1106_vm1, %v1093_v7  ;;  %3506 = vmatpush3.bf16.msra.mxu0 %v3503_v32 }
 0x2a1   : > { %3508 = vmatprep.subr.bf16.mxu0 %v3507_v34 }
 0x2a4   : > { %3510 = vmatpush3.bf16.msra.mxu0 %v3507_v34 }
 0x2a5   : > { %3522 = vmatprep.subr.bf16.mxu0 %v4566_v0 }
 0x2a7   : > { %3340 = vmatmul.mubr.msk.f32.vlgmr.msra.gmra.mrb[2].mxu0 %vm1106_vm1, %v1094_v15  ;;  %v1703_v15 = vld [vmem:[#allocation16] sm:$0xff] }
 0x2a8   : > { %3367 = vmatprep.mubr.msk.f32.mxu0 %vm4567_vm0, %v4568_v1 }
 0x370   : > { %v3330_v18 = vpop.f32.mrb[0].mxu1 }
 0x371   : > { %v1269_v19 = vadd.f32 %v3330_v18, %v3184_v17  ;;  %v1263_v20 = vpop.f32.mrb[1].mxu1  ;;  %v3526_v18 = vpack.c.bf16 %v1704_v16, %v1703_v15 }
 0x372   : > { %v1176_v21 = vpop.f32.mrb[0].mxu0  ;;  %v1264_v22 = vadd.f32 %v3184_v17, %v1263_v20  ;;  %v1705_v17 = vld [vmem:[#allocation16 + $0x10] sm:$0xff] }
 0x373   : > { %v3319_v23 = vpop.f32.mrb[1].mxu0  ;;  %v1177_v28 = vadd.f32 %v3182_v25, %v1176_v21  ;;  %v1787_v21 = vld [vmem:[%s5660_s23] sm:$0xff] }
 0x374   : > { %v3512_v26 = vpack.c.bf16 %v1269_v19, %v1264_v22  ;;  %v3818_v27 = vpack.i.bf16 %v1269_v19, %v1264_v22  ;;  %v1706_v19 = vld [vmem:[#allocation16 + $0x18] sm:$0xff] }
 0x375   : > { %v3529_v20 = vpack.c.bf16 %v1706_v19, %v1705_v17  ;;  %v1788_v22 = vld [vmem:[%s5660_s23 + $0x8] sm:$0xff] }
 0x376   : > { %3819 = vrot.lane.b32.xlu1 %v3818_v27, %s4569_s6  ;;  %3514 = vmatpush3.bf16.xpose.msk.msra.mxu1 %vm5330_vm3, %v3512_v26  ;;  %v3532_v23 = vpack.c.bf16 %v1788_v22, %v1787_v21 }
 0x377   : > { %3515 = vmatprep.subr.bf16.mxu1 %v4566_v0 }
 0x37a   : > { %1523 = vrot.lane.b32.xlu1 %v1177_v28, %s4569_s6  ;;  %v3341_v40 = vpop.f32.mrb[2].mxu0 }
 0x37b   : > { %v1355_v41 = vadd.f32 %v3341_v40, %v3187_v39  ;;  %v1349_v42 = vpop.f32.mrb[3].mxu0 }
 0x37c   : > { %v1350_v43 = vadd.f32 %v3187_v39, %v1349_v42  ;;  %v1891_v39 = vld [vmem:[#allocation20 + $0x18] sm:$0xff] }
 0x37d   : > { %3347 = vmatmul.mubr.msk.f32.vlgmr.msra.gmra.mrb[2].mxu1 %vm1358_vm2, %v1177_v28  ;;  %v1789_v28 = vld [vmem:[%s5660_s23 + $0x10] sm:$0xff] }
 0x37e   : > { %3353 = vmatprep.mubr.msk.f32.mxu1 %vm4567_vm0, %v4568_v1  ;;  %v3823_v44 = vpack.i.bf16 %v1355_v41, %v1350_v43  ;;  %v3516_v45 = vpack.c.bf16 %v1355_v41, %v1350_v43  ;;  %v3535_v30 = vpack.c.bf16 %v1790_v29, %v1789_v28  ;;  %v3200_v41 = vld [vmem:[#allocation19] ss:$0 sm:$0xff]  ;;  %v2154_v29 = vld [vmem:[%s5661_s27] sm:$0xff]  ;;  %s5664_s27 = sld [smem:[#allocation71_spill]] }
 0x380   : > { %3517 = vmatpush3.bf16.msra.mxu1 %v3516_v45 }
 0x381   : > { %3518 = vmatprep.subr.bf16.mxu1 %v4566_v0 }
 0x3e8   : > { %v3820_v52 = vpop.permute.xlu1 %3819 }
 0x3e9   : > { %v3822_v53 = vunpack.i.h.bf16 %v3820_v52  ;;  %v3821_v54 = vunpack.i.l.bf16 %v3820_v52 }
 0x3eb   : > { %v3519_v57 = vpack.c.bf16 %v3822_v53, %v3821_v54 }
 0x3ec   : > { %v1524_v58 = vpop.permute.xlu1 %1523 }
 0x450   : > { %v1434_v35 = vpop.f32.mrb[2].mxu1 }
 0x451   : > { %v1438_v36 = vmul.f32 0.25, %v1434_v35  ;;  %v3348_v37 = vpop.f32.mrb[3].mxu1  ;;  %v1888_v35 = vld [vmem:[#allocation20] sm:$0xff] }
 0x453   : > { %v1439_v38 = vsel %vm1358_vm2, %v1438_v36, -inf }
 0x454   : > { %1440 = vmax.xlane.f32.xlu0 %v1439_v38  ;;  %v1890_v38 = vld [vmem:[#allocation20 + $0x10] sm:$0xff] }
 0x455   : > { %v3541_v40 = vpack.c.bf16 %v1891_v39, %v1890_v38 }
 0x4e1   : > { %v1441_v46 = vpop.xlane.xlu0 %1440 }
 0x4e2   : > { %v1442_v47 = vsub.f32 %v1438_v36, %v1441_v46  ;;  %v1889_v36 = vld [vmem:[#allocation20 + $0x8] sm:$0xff] }
 0x4e3   : > { %v3538_v37 = vpack.c.bf16 %v1889_v36, %v1888_v35  ;;  %v2157_v35 = vld [vmem:[%s5662_s13 + $0x18] sm:$0xff] }
 0x4e4   : > { %v1443_v48 = vmul.f32 1.442695, %v1442_v47 }
 0x4e6   : > { %3828 = vpow2.f32 %v1443_v48 }
 0x4f0   : > { %v3829_v49 = vpop.eup %3828 }
 0x4f1   : > { %v1445_v50 = vsel %vm1358_vm2, %v3829_v49, 0.0 }
 0x4f2   : > { %1446 = vadd.xlane.f32.xlu0 %v1445_v50 }
 0x57f   : > { %v1447_v51 = vpop.xlane.xlu0 %1446 }
 0x580   : > { %3830 = vrcp.f32 %v1447_v51 }
 0x58a   : > { %v3831_v55 = vpop.eup %3830 }
 0x58b   : > { %v1449_v56 = vmul.f32 %v3831_v55, %v3829_v49 }
 0x58d   : > { %3354 = vmatmul.mubr.msk.f32.vlgmr.msra.gmra.mrb[4].mxu1 %vm1358_vm2, %v1449_v56 }
 0x58e   : > { %3521 = vmatpush3.bf16.xpose.msk.msra.mxu1 %vm5330_vm3, %v3519_v57  ;;  %3360 = vmatprep.mubr.msk.f32.mxu1 %vm4567_vm0, %v4568_v1 }
 0x58f   : > { %3531 = vmatprep.subr.bf16.mxu1 %v4566_v0 }
 0x595   : > { %3361 = vmatmul.mubr.msk.f32.vlgmr.msra.gmra.mrb[6].mxu1 %vm1358_vm2, %v1524_v58 }
 0x596   : > { %3389 = vmatprep.mubr.msk.f32.mxu1 %vm4567_vm0, %v4568_v1  ;;  %3533 = vmatpush3.bf16.msra.mxu1 %v3532_v23 }
 0x597   : > { %3534 = vmatprep.subr.bf16.mxu1 %v4566_v0 }
 0x59a   : > { %3536 = vmatpush3.bf16.msra.mxu1 %v3535_v30  ;;  %v2155_v30 = vld [vmem:[%s5662_s13 + $0x8] sm:$0xff] }
 0x59b   : > { %3543 = vmatprep.subr.bf16.mxu1 %v4566_v0 }
 0x660   : > { %v1519_v59 = vpop.f32.mrb[4].mxu1 }
 0x661   : > { %v3355_v60 = vpop.f32.mrb[5].mxu1 }
 0x668   : > { %v1601_v61 = vpop.f32.mrb[6].mxu1 }
 0x669   : > { %v1605_v62 = vmul.f32 0.25, %v1601_v61  ;;  %v3362_v63 = vpop.f32.mrb[7].mxu1  ;;  %v1989_v61 = vld [vmem:[#allocation23] sm:$0xff] }
 0x66b   : > { %v1606_v2 = vsel %vm1358_vm2, %v1605_v62, -inf }
 0x66c   : > { %1607 = vmax.xlane.f32.xlu0 %v1606_v2  ;;  %v2073_v2 = vld [vmem:[#allocation26] sm:$0xff] }
 0x682   : > { %3824 = vrot.lane.b32.xlu0 %v3823_v44, %s4569_s6 }
 0x6f9   : > { %v1608_v3 = vpop.xlane.xlu0 %1607 }
 0x6fa   : > { %v1609_v4 = vsub.f32 %v1605_v62, %v1608_v3  ;;  %v1990_v62 = vld [vmem:[#allocation23 + $0x8] sm:$0xff] }
 0x6fb   : > { %v3544_v63 = vpack.c.bf16 %v1990_v62, %v1989_v61  ;;  %v2074_v3 = vld [vmem:[#allocation26 + $0x8] sm:$0xff] }
 0x6fc   : > { %v1610_v5 = vmul.f32 1.442695, %v1609_v4  ;;  %v3550_v4 = vpack.c.bf16 %v2074_v3, %v2073_v2 }
 0x6fd   : > { %v3825_v6 = vpop.permute.xlu0 %3824 }
 0x6fe   : > { %3832 = vpow2.f32 %v1610_v5  ;;  %v3827_v7 = vunpack.i.h.bf16 %v3825_v6  ;;  %v3826_v8 = vunpack.i.l.bf16 %v3825_v6  ;;  %v1991_v5 = vld [vmem:[#allocation23 + $0x10] sm:$0xff]  ;;  %v1992_v6 = vld [vmem:[#allocation23 + $0x18] sm:$0xff] }
 0x700   : > { %v3523_v9 = vpack.c.bf16 %v3827_v7, %v3826_v8  ;;  %v3547_v7 = vpack.c.bf16 %v1992_v6, %v1991_v5  ;;  %v2075_v8 = vld [vmem:[#allocation26 + $0x10] sm:$0xff] }
 0x702   : > { %3524 = vmatpush3.bf16.msra.mxu0 %v3523_v9  ;;  %v2076_v9 = vld [vmem:[#allocation26 + $0x18] sm:$0xff] }
 0x703   : > { %3525 = vmatprep.subr.bf16.mxu0 %v4566_v0 }
 0x708   : > { %v3833_v10 = vpop.eup %3832 }
 0x709   : > { %v1612_v11 = vsel %vm1358_vm2, %v3833_v10, 0.0 }
 0x70a   : > { %1613 = vadd.xlane.f32.xlu1 %v1612_v11  ;;  %v3202_v11 = vld [vmem:[#allocation22] ss:$0 sm:$0xff] }
 0x797   : > { %v1614_v12 = vpop.xlane.xlu1 %1613 }
 0x798   : > { %3834 = vrcp.f32 %v1614_v12 }
 0x7a2   : > { %v3835_v13 = vpop.eup %3834 }
 0x7a3   : > { %v1616_v14 = vmul.f32 %v3835_v13, %v3833_v10  ;;  %v3553_v10 = vpack.c.bf16 %v2076_v9, %v2075_v8 }
 0x7a5   : > { %3368 = vmatmul.mubr.msk.f32.vlgmr.msra.gmra.mrb[4].mxu0 %vm1358_vm2, %v1616_v14 }
 0x7a6   : > { %3378 = vmatprep.mubr.msk.f32.mxu0 %vm4567_vm0, %v4568_v1  ;;  %3527 = vmatpush3.bf16.msra.mxu0 %v3526_v18 }
 0x7a7   : > { %3528 = vmatprep.subr.bf16.mxu0 %v4566_v0 }
 0x7aa   : > { %3530 = vmatpush3.bf16.msra.mxu0 %v3529_v20 }
 0x7ab   : > { %3537 = vmatprep.subr.bf16.mxu0 %v4566_v0 }
 0x878   : > { %v1694_v24 = vpop.f32.mrb[4].mxu0 }
 0x879   : > { %1699 = vrot.lane.b32.xlu0 %v1694_v24, %s4570_s0  ;;  %v3369_v25 = vpop.f32.mrb[5].mxu0 }
 0x8eb   : > { %v1700_v26 = vpop.permute.xlu0 %1699 }
 0x8ec   : > { %v1702_v27 = vsel %vm1358_vm2, %v1519_v59, %v1700_v26 }
 0x8ed   : > { %3379 = vmatmul.mubr.msk.f32.vlgmr.msra.gmra.mrb[6].mxu0 %vm1106_vm1, %v1702_v27 }
 0x8ee   : > { %3400 = vmatprep.mubr.msk.f32.mxu0 %vm4567_vm0, %v4568_v1  ;;  %3539 = vmatpush3.bf16.msra.mxu0 %v3538_v37  ;;  %v3206_v37 = vld [vmem:[#allocation28] ss:$0 sm:$0xff] }
 0x8ef   : > { %3540 = vmatprep.subr.bf16.mxu0 %v4566_v0 }
 0x8f2   : > { %3542 = vmatpush3.bf16.msra.mxu0 %v3541_v40  ;;  %v3204_v40 = vld [vmem:[#allocation25] ss:$0 sm:$0xff] }
 0x8f3   : > { %3549 = vmatprep.subr.bf16.mxu0 %v4566_v0 }
 0x9c0   : > { %v1783_v32 = vpop.f32.mrb[6].mxu0 }
 0x9c1   : > { %v1784_v33 = vadd.f32 %v3198_v31, %v1783_v32  ;;  %v3380_v34 = vpop.f32.mrb[7].mxu0  ;;  %v3556_v32 = vpack.c.bf16 %v2155_v30, %v2154_v29  ;;  %v2655_v29 = vld [vmem:[#allocation31 + $0x10] sm:$0xff]  ;;  %v2656_v30 = vld [vmem:[#allocation31 + $0x18] sm:$0xff] }
 0x9c2   : > { %v2156_v34 = vld [vmem:[%s5662_s13 + $0x10] sm:$0xff] }
 0x9c3   : > { %3390 = vmatmul.mubr.msk.f32.vlgmr.msra.gmra.mrb[8].mxu1 %vm1106_vm1, %v1784_v33  ;;  %v3559_v36 = vpack.c.bf16 %v2157_v35, %v2156_v34 }
 0x9c4   : > { %3411 = vmatprep.mubr.msk.f32.mxu1 %vm4567_vm0, %v4568_v1  ;;  %3545 = vmatpush3.bf16.msra.mxu1 %v3544_v63 }
 0x9c5   : > { %3546 = vmatprep.subr.bf16.mxu1 %v4566_v0 }
 0x9c8   : > { %3548 = vmatpush3.bf16.msra.mxu1 %v3547_v7 }
 0x9c9   : > { %3555 = vmatprep.subr.bf16.mxu1 %v4566_v0 }
 0xa96   : > { %v1867_v42 = vpop.f32.mrb[8].mxu1 }
 0xa97   : > { %v1868_v43 = vadd.f32 %v3200_v41, %v1867_v42  ;;  %v3391_v44 = vpop.f32.mrb[9].mxu1 }
 0xa99   : > { %v1872_v45 = vand.u32 2147483647, %v1868_v43  ;;  %v1871_v56 = vmax.f32 %v1868_v43, 0.0 }
 0xa9b   : > { %v1873_v46 = vsub.f32 0.0, %v1872_v45  ;;  %v3208_v45 = vld [vmem:[%s5663_s26] ss:$0 sm:$0xff] }
 0xa9d   : > { %v1874_v47 = vmul.f32 1.442695, %v1873_v46 }
 0xa9f   : > { %3836 = vpow2.f32 %v1874_v47 }
 0xaa9   : > { %v3837_v48 = vpop.eup %3836 }
 0xaaa   : > { %v1876_v49 = vadd.f32 1.0, %v3837_v48  ;;  %v1879_v50 = vmul.f32 -0.5, %v3837_v48  ;;  %v1882_v52 = vand.u32 2147483647, %v3837_v48 }
 0xaac   : > { %3838 = vlog2.f32 %v1876_v49  ;;  %v1880_v51 = vadd.f32 1.0, %v1879_v50  ;;  %vm1883_vm4 = vcmp.lt.f32.partialorder %v1882_v52, 0.0004427343 }
 0xaae   : > { %v1881_v55 = vmul.f32 %v3837_v48, %v1880_v51 }
 0xab6   : > { %v3839_v53 = vpop.eup %3838 }
 0xab7   : > { %v1878_v54 = vmul.f32 0.6931472, %v3839_v53 }
 0xab9   : > { %v1884_v57 = vsel %vm1883_vm4, %v1881_v55, %v1878_v54 }
 0xaba   : > { %v1885_v58 = vadd.f32 %v1884_v57, %v1871_v56 }
 0xabc   : > { %3840 = vtanh.f32 %v1885_v58 }
 0xac6   : > { %v3841_v59 = vpop.eup %3840 }
 0xac7   : > { %v1887_v60 = vmul.f32 %v3841_v59, %v1868_v43 }
 0xac9   : > { %3401 = vmatmul.mubr.msk.f32.vlgmr.msra.gmra.mrb[8].mxu0 %vm1106_vm1, %v1887_v60 }
 0xaca   : > { %3422 = vmatprep.mubr.msk.f32.mxu0 %vm4567_vm0, %v4568_v1  ;;  %3551 = vmatpush3.bf16.msra.mxu0 %v3550_v4 }
 0xacb   : > { %3552 = vmatprep.subr.bf16.mxu0 %v4566_v0 }
 0xace   : > { %3554 = vmatpush3.bf16.msra.mxu0 %v3553_v10 }
 0xacf   : > { %3436 = vmatprep.subr.mxu0 %v4568_v1 }
 0xb9c   : > { %v1968_v12 = vpop.f32.mrb[8].mxu0 }
 0xb9d   : > { %v1969_v13 = vadd.f32 %v3202_v11, %v1968_v12  ;;  %v3402_v14 = vpop.f32.mrb[9].mxu0 }
 0xb9e   : > { %v2569_v14 = vld [vmem:[#allocation29] sm:$0xff] }
 0xb9f   : > { %v1973_v15 = vand.u32 2147483647, %v1969_v13  ;;  %v1972_v26 = vmax.f32 %v1969_v13, 0.0 }
 0xba1   : > { %v1974_v16 = vsub.f32 0.0, %v1973_v15  ;;  %v2570_v15 = vld [vmem:[#allocation29 + $0x8] sm:$0xff] }
 0xba3   : > { %v1975_v17 = vmul.f32 1.442695, %v1974_v16  ;;  %v2571_v16 = vld [vmem:[#allocation29 + $0x10] sm:$0xff] }
 0xba5   : > { %3842 = vpow2.f32 %v1975_v17  ;;  %v3562_v17 = vpack.c.bf16 %v2570_v15, %v2569_v14 }
 0xbaf   : > { %v3843_v18 = vpop.eup %3842 }
 0xbb0   : > { %v1977_v19 = vadd.f32 1.0, %v3843_v18  ;;  %v1980_v20 = vmul.f32 -0.5, %v3843_v18  ;;  %v1983_v22 = vand.u32 2147483647, %v3843_v18 }
 0xbb2   : > { %3844 = vlog2.f32 %v1977_v19  ;;  %v1981_v21 = vadd.f32 1.0, %v1980_v20  ;;  %vm1984_vm5 = vcmp.lt.f32.partialorder %v1983_v22, 0.0004427343  ;;  %v2653_v22 = vld [vmem:[#allocation31] sm:$0xff] }
 0xbb4   : > { %v1982_v25 = vmul.f32 %v3843_v18, %v1981_v21  ;;  %v2572_v18 = vld [vmem:[#allocation29 + $0x18] sm:$0xff] }
 0xbb5   : > { %v3565_v19 = vpack.c.bf16 %v2572_v18, %v2571_v16 }
 0xbbc   : > { %v3845_v23 = vpop.eup %3844 }
 0xbbd   : > { %v1979_v24 = vmul.f32 0.6931472, %v3845_v23  ;;  %v2654_v23 = vld [vmem:[#allocation31 + $0x8] sm:$0xff] }
 0xbbf   : > { %v1985_v27 = vsel %vm1984_vm5, %v1982_v25, %v1979_v24  ;;  %v3568_v24 = vpack.c.bf16 %v2654_v23, %v2653_v22 }
 0xbc0   : > { %v1986_v28 = vadd.f32 %v1985_v27, %v1972_v26 }
 0xbc2   : > { %3846 = vtanh.f32 %v1986_v28 }
 0xbcc   : > { %v3847_v31 = vpop.eup %3846 }
 0xbcd   : > { %v1988_v33 = vmul.f32 %v3847_v31, %v1969_v13  ;;  %v3571_v31 = vpack.c.bf16 %v2656_v30, %v2655_v29 }
 0xbcf   : > { %3412 = vmatmul.mubr.msk.f32.vlgmr.msra.gmra.mrb[10].mxu1 %vm1106_vm1, %v1988_v33  ;;  %3423 = vmatmul.mubr.msk.f32.vlgmr.msra.gmra.mrb[10].mxu0 %vm1106_vm1, %v1988_v33 }
 0xbd0   : > { %3557 = vmatpush3.bf16.msra.mxu1 %v3556_v32  ;;  %3433 = vmatprep.mubr.msk.f32.mxu1 %vm4567_vm0, %v4568_v1  ;;  %v3216_v32 = vld [vmem:[%s5664_s27] ss:$0 sm:$0xff]  ;;  %s5475_s27 = scalar_lea.hbm %s5667_s8, %s3223_s19 }
 0xbd1   : > { %3558 = vmatprep.subr.bf16.mxu1 %v4566_v0  ;;  %3438 = vmatprep.mubr.msk.f32.mxu0 %vm4567_vm0, %v4568_v1 }
 0xbd4   : > { %3560 = vmatpush3.bf16.msra.mxu1 %v3559_v36  ;;  %v2754_v36 = vld [vmem:[#allocation32] sm:$0xff] }
 0xbd5   : > { %3441 = vmatprep.subr.mxu1 %v4568_v1 }
 0xbd7   : > { %3434 = vmatmul.mubr.msk.f32.vlgmr.msra.gmra.mrb[12].mxu1 %vm1106_vm1, %v1988_v33 }
 0xbd8   : > { %3443 = vmatprep.mubr.msk.f32.mxu1 %vm4567_vm0, %v4568_v1 }
 0xca2   : > { %v2069_v38 = vpop.f32.mrb[10].mxu1  ;;  %v2150_v39 = vpop.f32.mrb[10].mxu0 }
 0xca3   : > { %v2151_v41 = vadd.f32 %v3206_v37, %v2150_v39  ;;  %v3413_v42 = vpop.f32.mrb[11].mxu1  ;;  %v3424_v43 = vpop.f32.mrb[11].mxu0  ;;  %v2070_v44 = vadd.f32 %v3204_v40, %v2069_v38  ;;  %v2755_v37 = vld [vmem:[#allocation32 + $0x8] sm:$0xff]  ;;  %v2757_v39 = vld [vmem:[#allocation32 + $0x18] sm:$0xff] }
 0xca4   : > { %v3574_v38 = vpack.c.bf16 %v2755_v37, %v2754_v36 }
 0xca5   : > { %2399 = vrot.lane.b32.xlu0 %v2151_v41, %s4569_s6  ;;  %3437 = vmatpush3.xpose.msk.msra.mxu0 %vm1358_vm2, %v2151_v41  ;;  %v3218_v41 = vld [vmem:[%s5665_s4] ss:$0 sm:$0xff]  ;;  %s4438_s4 = scalar_lea.vmem %s4437_s17, 256 }
 0xca6   : > { %3446 = vmatprep.subr.mxu0 %v4568_v1  ;;  %p4440_p7 = scmp.lt.s32.totalorder %s4438_s4, %s4432_s2 }
 0xca8   : > { %3439 = vmatmul.mubr.msk.f32.vlgmr.msra.gmra.mrb[12].mxu0 %vm1358_vm2, %v2070_v44  ;;  %p4441_p9 = por %p4440_p7, %p4439_p5 }
 0xca9   : > { %2397 = vrot.lane.b32.xlu0 %v2070_v44, %s4569_s6  ;;  %3448 = vmatprep.mubr.msk.f32.mxu0 %vm4567_vm0, %v4568_v1 }
 0xcaa   : > { %v2231_v46 = vpop.f32.mrb[12].mxu1  ;;  %p4442_p8 = pnand %p4441_p9, %p4435_p10 }
 0xcab   : > { %v2232_v47 = vadd.f32 %v3208_v45, %v2231_v46  ;;  %v3435_v48 = vpop.f32.mrb[13].mxu1 }
 0xcad   : > { %3442 = vmatpush3.msra.mxu1 %v2232_v47 }
 0xcae   : > { %3451 = vmatprep.subr.mxu1 %v4568_v1 }
 0xd17   : > { %v2400_v49 = vpop.permute.xlu0 %2399 }
 0xd18   : > { %3447 = vmatpush3.xpose.msk.msra.mxu0 %vm1358_vm2, %v2400_v49 }
 0xd19   : > { %3561 = vmatprep.subr.bf16.mxu0 %v4566_v0 }
 0xd1b   : > { %v2398_v50 = vpop.permute.xlu0 %2397 }
 0xd1c   : > { %3449 = vmatmul.mubr.msk.f32.vlgmr.msra.gmra.mrb[14].mxu0 %vm1358_vm2, %v2398_v50 }
 0xd1d   : > { %3464 = vmatprep.mubr.msk.f32.mxu0 %vm4567_vm0, %v4568_v1  ;;  %3563 = vmatpush3.bf16.msra.mxu0 %v3562_v17 }
 0xd1e   : > { %3564 = vmatprep.subr.bf16.mxu0 %v4566_v0 }
 0xd21   : > { %3566 = vmatpush3.bf16.msra.mxu0 %v3565_v19 }
 0xd22   : > { %3573 = vmatprep.subr.bf16.mxu0 %v4566_v0 }
 0xd7b   : > { %v2307_v51 = vpop.f32.mrb[12].mxu0 }
 0xd7c   : > { %v2311_v52 = vmul.f32 0.25, %v2307_v51  ;;  %v3440_v53 = vpop.f32.mrb[13].mxu0 }
 0xd7e   : > { %v2313_v54 = vsel %vm2312_vm6, %v2311_v52, -inf }
 0xd7f   : > { %2314 = vmax.xlane.f32.xlu1 %v2313_v54 }
 0xdef   : > { %v2471_v55 = vpop.f32.mrb[14].mxu0 }
 0xdf0   : > { %v2475_v56 = vmul.f32 0.25, %v2471_v55  ;;  %v3450_v57 = vpop.f32.mrb[15].mxu0 }
 0xdf2   : > { %v2476_v58 = vsel %vm2312_vm6, %v2475_v56, -inf }
 0xdf3   : > { %2477 = vmax.xlane.f32.xlu0 %v2476_v58 }
 0xe0c   : > { %v2315_v59 = vpop.xlane.xlu1 %2314 }
 0xe0d   : > { %v2316_v60 = vsub.f32 %v2311_v52, %v2315_v59 }
 0xe0f   : > { %v2317_v61 = vmul.f32 1.442695, %v2316_v60  ;;  %v3220_v60 = vld [vmem:[%s5666_s29] ss:$0 sm:$0xff] }
 0xe11   : > { %3848 = vpow2.f32 %v2317_v61 }
 0xe1b   : > { %v3849_v62 = vpop.eup %3848 }
 0xe1c   : > { %v2319_v63 = vsel %vm2312_vm6, %v3849_v62, 0.0 }
 0xe1d   : > { %2320 = vadd.xlane.f32.xlu1 %v2319_v63 }
 0xe80   : > { %v2478_v2 = vpop.xlane.xlu0 %2477 }
 0xe81   : > { %v2479_v3 = vsub.f32 %v2475_v56, %v2478_v2 }
 0xe83   : > { %v2480_v4 = vmul.f32 1.442695, %v2479_v3 }
 0xe85   : > { %3850 = vpow2.f32 %v2480_v4 }
 0xe8f   : > { %v3851_v5 = vpop.eup %3850 }
 0xe90   : > { %v2482_v6 = vsel %vm2312_vm6, %v3851_v5, 0.0 }
 0xe91   : > { %2483 = vadd.xlane.f32.xlu1 %v2482_v6 }
 0xea2   : > { %2488 = vrot.lane.b32.xlu1 %v2232_v47, %s4569_s6 }
 0xeaa   : > { %v2321_v7 = vpop.xlane.xlu1 %2320 }
 0xeab   : > { %3852 = vrcp.f32 %v2321_v7 }
 0xeb5   : > { %v3853_v8 = vpop.eup %3852 }
 0xeb6   : > { %v2323_v9 = vmul.f32 %v3853_v8, %v3849_v62 }
 0xeb8   : > { %3444 = vmatmul.mubr.msk.f32.vlgmr.msra.gmra.mrb[14].mxu1 %vm2312_vm6, %v2323_v9 }
 0xeb9   : > { %3453 = vmatprep.mubr.msk.f32.mxu1 %vm4567_vm0, %v4568_v1 }
 0xf1e   : > { %v2484_v10 = vpop.xlane.xlu1 %2483 }
 0xf1f   : > { %3854 = vrcp.f32 %v2484_v10 }
 0xf22   : > { %v2489_v11 = vpop.permute.xlu1 %2488 }
 0xf23   : > { %3452 = vmatpush3.msra.mxu1 %v2489_v11 }
 0xf24   : > { %3567 = vmatprep.subr.bf16.mxu1 %v4566_v0 }
 0xf29   : > { %v3855_v12 = vpop.eup %3854 }
 0xf2a   : > { %v2486_v13 = vmul.f32 %v3855_v12, %v3851_v5 }
 0xf2c   : > { %3454 = vmatmul.mubr.msk.f32.vlgmr.msra.gmra.mrb[16].mxu1 %vm2312_vm6, %v2486_v13 }
 0xf2d   : > { %3475 = vmatprep.mubr.msk.f32.mxu1 %vm4567_vm0, %v4568_v1  ;;  %3569 = vmatpush3.bf16.msra.mxu1 %v3568_v24 }
 0xf2e   : > { %3570 = vmatprep.subr.bf16.mxu1 %v4566_v0 }
 0xf31   : > { %3572 = vmatpush3.bf16.msra.mxu1 %v3571_v31 }
 0xf8b   : > { %v2393_v20 = vpop.f32.mrb[14].mxu1 }
 0xf8c   : > { %v3445_v21 = vpop.f32.mrb[15].mxu1 }
 0xfff   : > { %v2560_v25 = vpop.f32.mrb[16].mxu1 }
0x1000   : > { %2565 = vrot.lane.b32.xlu1 %v2560_v25, %s4570_s0  ;;  %v3455_v26 = vpop.f32.mrb[17].mxu1  ;;  %s2857_s0 = scalar_lea.sflag [#allocation4], %s5254_s11 }
0x1072   : > { %v2566_v27 = vpop.permute.xlu1 %2565 }
0x1073   : > { %v2568_v28 = vsel %vm1358_vm2, %v2393_v20, %v2566_v27 }
0x1074   : > { %3465 = vmatmul.mubr.msk.f32.vlgmr.msra.gmra.mrb[16].mxu0 %vm1106_vm1, %v2568_v28 }
0x1075   : > { %3486 = vmatprep.mubr.msk.f32.mxu0 %vm4567_vm0, %v4568_v1  ;;  %3575 = vmatpush3.bf16.msra.mxu0 %v3574_v38  ;;  %v2756_v1 = vld [vmem:[#allocation32 + $0x10] sm:$0xff] }
0x1076   : > { %3576 = vmatprep.subr.bf16.mxu0 %v4566_v0  ;;  %v3577_v40 = vpack.c.bf16 %v2757_v39, %v2756_v1 }
0x1079   : > { %3578 = vmatpush3.bf16.msra.mxu0 %v3577_v40 }
0x1147   : > { %v2649_v33 = vpop.f32.mrb[16].mxu0 }
0x1148   : > { %v2650_v34 = vadd.f32 %v3216_v32, %v2649_v33  ;;  %v3466_v35 = vpop.f32.mrb[17].mxu0 }
0x114a   : > { %3476 = vmatmul.mubr.msk.f32.vlgmr.msra.gmra.mrb[18].mxu1 %vm1106_vm1, %v2650_v34 }
0x121d   : > { %v2733_v42 = vpop.f32.mrb[18].mxu1 }
0x121e   : > { %v2734_v43 = vadd.f32 %v3218_v41, %v2733_v42  ;;  %v3477_v44 = vpop.f32.mrb[19].mxu1 }
0x1220   : > { %v2738_v45 = vand.u32 2147483647, %v2734_v43  ;;  %v2737_v55 = vmax.f32 %v2734_v43, 0.0 }
0x1222   : > { %v2739_v46 = vsub.f32 0.0, %v2738_v45 }
0x1224   : > { %v2740_v47 = vmul.f32 1.442695, %v2739_v46 }
0x1226   : > { %3856 = vpow2.f32 %v2740_v47 }
0x1230   : > { %v3857_v48 = vpop.eup %3856 }
0x1231   : > { %v2742_v49 = vadd.f32 1.0, %v3857_v48  ;;  %v2745_v50 = vmul.f32 -0.5, %v3857_v48  ;;  %v2748_v51 = vand.u32 2147483647, %v3857_v48 }
0x1233   : > { %3858 = vlog2.f32 %v2742_v49  ;;  %v2746_v0 = vadd.f32 1.0, %v2745_v50  ;;  %vm2749_vm7 = vcmp.lt.f32.partialorder %v2748_v51, 0.0004427343 }
0x1235   : > { %v2747_v54 = vmul.f32 %v3857_v48, %v2746_v0 }
0x123d   : > { %v3859_v52 = vpop.eup %3858 }
0x123e   : > { %v2744_v53 = vmul.f32 0.6931472, %v3859_v52 }
0x1240   : > { %v2750_v56 = vsel %vm2749_vm7, %v2747_v54, %v2744_v53 }
0x1241   : > { %v2751_v57 = vadd.f32 %v2750_v56, %v2737_v55 }
0x1243   : > { %3860 = vtanh.f32 %v2751_v57 }
0x124d   : > { %v3861_v58 = vpop.eup %3860 }
0x124e   : > { %v2753_v59 = vmul.f32 %v3861_v58, %v2734_v43 }
0x1250   : > { %3487 = vmatmul.mubr.msk.f32.vlgmr.msra.gmra.mrb[18].mxu0 %vm1106_vm1, %v2753_v59 }
0x1323   : > { %v2834_v61 = vpop.f32.mrb[18].mxu0 }
0x1324   : > { %v2835_v62 = vadd.f32 %v3220_v60, %v2834_v61  ;;  %v3488_v63 = vpop.f32.mrb[19].mxu0 }
0x1326   : > { %v2839_v2 = vand.u32 2147483647, %v2835_v62  ;;  %v2838_v13 = vmax.f32 %v2835_v62, 0.0 }
0x1328   : > { %v2840_v3 = vsub.f32 0.0, %v2839_v2 }
0x132a   : > { %v2841_v4 = vmul.f32 1.442695, %v2840_v3 }
0x132c   : > { %3862 = vpow2.f32 %v2841_v4 }
0x1336   : > { %v3863_v5 = vpop.eup %3862 }
0x1337   : > { %v2843_v6 = vadd.f32 1.0, %v3863_v5  ;;  %v2846_v7 = vmul.f32 -0.5, %v3863_v5  ;;  %v2849_v9 = vand.u32 2147483647, %v3863_v5 }
0x1339   : > { %3864 = vlog2.f32 %v2843_v6  ;;  %v2847_v8 = vadd.f32 1.0, %v2846_v7  ;;  %vm2850_vm8 = vcmp.lt.f32.partialorder %v2849_v9, 0.0004427343 }
0x133b   : > { %v2848_v12 = vmul.f32 %v3863_v5, %v2847_v8 }
0x1343   : > { %v3865_v10 = vpop.eup %3864 }
0x1344   : > { %v2845_v11 = vmul.f32 0.6931472, %v3865_v10 }
0x1346   : > { %v2851_v14 = vsel %vm2850_vm8, %v2848_v12, %v2845_v11 }
0x1347   : > { %v2852_v15 = vadd.f32 %v2851_v14, %v2838_v13 }
0x1349   : > { %3866 = vtanh.f32 %v2852_v15 }
0x1353   : > { %v3867_v16 = vpop.eup %3866 }
0x1354   : > { %v2854_v17 = vmul.f32 %v3867_v16, %v2835_v62 }
0x1356   : > { %2855 = vst.msk [vmem:[%s1091_s1] sm:$0xff] %vm1106_vm1, %v2854_v17 }
0x1357   : > { %4445 = shalt.err (!%p4442_p8)
}
0x1358   : > { %s4446_s11 = scalar_lea.hbm %s5475_s27, 128  ;;  %s4450_s29 = scalar_lea.hbm %s5667_s8, 256 }
0x1359   : > { %p4447_p11 = scmp.ne.s32.totalorder %s5475_s27, %s4446_s11  ;;  %p4451_p13 = scmp.lt.u32.totalorder %s5475_s27, %s5667_s8 }
0x135a   : > { %p4452_p1 = scmp.lt.u32.totalorder %s4450_s29, %s4446_s11  ;;  %p4454_p6 = scmp.lt.u32.totalorder %s4446_s11, %s5475_s27 }
0x135b   : > { %p4448_p0 = pnand %p4447_p11, %p5668_p2 }
0x135c   : > { %p4453_p3 = por %p4452_p1, %p4451_p13 }
0x135d   : > { %p4449_p12 = pneg %p4448_p0 }
0x135e   : > { %p4455_p4 = por %p4454_p6, %p4453_p3 }
0x1360   : > { %p4456_p10 = pnand %p4455_p4, %p4449_p12 }
0x1362   : > { %4459 = shalt.err (!%p4456_p10)
}
0x1363   : > { %3655 = dma.vmem_to_hbm [thread:$0]  (%p5668_p2), %s5477_s5, 128, %s5475_s27, %s2857_s0  }
0x1364 PF: > { %s5669_s26 = sld [smem:[#allocation48_spill]]  ;;  %p5670_p5 = scmp.ne.s32.totalorder %s5631_s16, 0 }
0x1365   : > { %p5671_p7 = scmp.ge.s32.totalorder %s4542_s28, 2 }
0x1367   : > { %p3720_p9 = pnand %p5671_p7, %p5670_p5 }
0x136a   : > { %s2882_s6 = sand.u32 1, %s5669_s26  }
0x136b   : > { %s2883_s2 = scalar_lea.sflag [#allocation4], %s2882_s6 }
0x136c   : > { %4525 = dma.done.wait (!%p3720_p9), %s2883_s2, 128  }
0x136d   : > { %4527 = vsyncadd (!%p3720_p9), %s2883_s2, 4294967168  ;;  %p51_p8 = scmp.ge.s32.totalorder %s5131_s30, 4   ;;  %s5672_s27 = smov %s4534_s3 }
0x136e   : > { %s5673_s3 = smov %s4538_s7  ;;  %s5674_s7 = smov %s5142_s12 }
0x136f   : > { %s5675_s28 = smov %s5131_s30  ;;  %53 = sbr.rel (!%p51_p8) target bundleno = 41 (0x29), region = 254 }
0x1376   :  { %2888 = vsyncpa [#allocation3], 1 }
0x1377   :  { %2890 = vsyncpa [#allocation3 + $0x1], 1 }
0x1378   :  { %2891 = vsyncpa [#allocation6], 1 }
0x1379   :  { %2893 = vsyncpa [#allocation6 + $0x1], 1 }
0x137a   :  { %2894 = vsyncpa [#allocation9], 1 }
0x137b   :  { %2895 = vsyncpa [#allocation12], 1 }
0x137c   :  { %2896 = vsyncpa [#allocation15], 1 }
0x137d   :  { %2897 = vsyncpa [#allocation18], 1 }
0x137e   :  { %2898 = vsyncpa [#allocation21], 1 }
0x137f   :  { %2899 = vsyncpa [#allocation24], 1 }
0x1380   :  { %2900 = vsyncpa [#allocation27], 1 }
0x1381   :  { %2901 = vsyncpa [#allocation30], 1 }
0x1382   :  { %2902 = vsyncpa [#allocation33], 1 }
0x1383   :  { %2903 = vsyncpa [#allocation4], 1 }
0x1384   :  { %2905 = vsyncpa [#allocation4 + $0x1], 1 }

</bundles_post_ra>
